<compile_context>
chip_gen: v5e
topology: v5e:2x2
jax: 0.10.0
libtpu: 0.0.40
codegen_flags: <defaults>
</compile_context>

<pallas_src>
from math import sqrt

import jax
import jax.numpy as jnp
from jax import lax
from jax.experimental import pallas as pl
from jax.experimental.pallas import tpu as pltpu

# ---------------- model hyper-parameters (small, consistent with the module) ---
BATCH = 2
SEQ = 8
INP_SIZE = 2
D_MODEL = 32
DFF = 64
NUM_HEADS = 2          # hard-coded `2` in Encoder.__init__ call to TE
NUM_LAYERS = 2         # module default is 5; kept small for the example
LN_EPS = 1e-5


def _layer_norm(x, gamma, beta):
    # x: (M, D), gamma/beta: (1, D); biased variance, matches torch.nn.LayerNorm
    mean = jnp.mean(x, axis=-1, keepdims=True)
    xc = x - mean
    var = jnp.mean(xc * xc, axis=-1, keepdims=True)
    inv = lax.rsqrt(var + LN_EPS)
    return xc * inv * gamma + beta


# ---------------------------- fused Pallas kernel -------------------------------

def fused_encoder_kernel(x_ref, mod_w_ref, mod_b_ref,
                         wqkv_ref, bqkv_ref, wo_ref, bo_ref,
                         w1_ref, b1_ref, w2_ref, b2_ref,
                         g1_ref, be1_ref, g2_ref, be2_ref,
                         o_ref, attn_scratch):
    """moderator Linear + NUM_LAYERS post-LN transformer encoder layers, fully fused.

    Activations (B*S, D) = (16, 32) stay in VMEM/vregs for the whole call; all
    weights (stacked over layers on axis 0) are VMEM-resident and DMA'd once.
    """
    D = D_MODEL
    H = NUM_HEADS
    dh = D // H
    scale = 1.0 / sqrt(dh)

    # --- enc_moderator: Linear(inp_size -> d_model), batch folded into M --------
    h = jnp.dot(x_ref[...], mod_w_ref[...],
                preferred_element_type=jnp.float32) + mod_b_ref[...]     # (M, D)

    for li in range(NUM_LAYERS):                       # unrolled, sequential
        wqkv = wqkv_ref[li]; bqkv = bqkv_ref[li]       # (D, 3D), (1, 3D)
        wo = wo_ref[li];     bo = bo_ref[li]
        w1 = w1_ref[li];     b1 = b1_ref[li]
        w2 = w2_ref[li];     b2 = b2_ref[li]
        g1 = g1_ref[li];     be1 = be1_ref[li]
        g2 = g2_ref[li];     be2 = be2_ref[li]

        # --- fused QKV projection: one (M,D) x (D,3D) matmul ---------------------
        qkv = jnp.dot(h, wqkv, preferred_element_type=jnp.float32) + bqkv  # (M, 3D)
        q = qkv[:, 0 * D:1 * D] * scale               # fold 1/sqrt(dh) into Q once
        k = qkv[:, 1 * D:2 * D]
        v = qkv[:, 2 * D:3 * D]

        # --- multi-head self attention (scores must stay per-batch) -------------
        for b in range(BATCH):
            rs = slice(b * SEQ, (b + 1) * SEQ)
            qb = q[rs]                                                   # (S, D)
            kb = k[rs]
            vb = v[rs]
            for hh in range(H):
                cs = slice(hh * dh, (hh + 1) * dh)
                qh = qb[:, cs]                                           # (S, dh)
                kh = kb[:, cs]
                vh = vb[:, cs]
                # transpose-free scores: contract on dh for both operands
                s = lax.dot_general(qh, kh, (((1,), (1,)), ((), ())),
                                    preferred_element_type=jnp.float32)  # (S, S)
                m = jnp.max(s, axis=-1, keepdims=True)
                e = jnp.exp(s - m)
                denom = jnp.sum(e, axis=-1, keepdims=True)
                p = e * pl.reciprocal(denom, approx=True)
                ctx = jnp.dot(p, vh, preferred_element_type=jnp.float32)  # (S, dh)
                # write head output straight into its D-slice (no concatenate)
                attn_scratch[rs, cs] = ctx

        attn = jnp.dot(attn_scratch[...], wo,
                       preferred_element_type=jnp.float32) + bo          # (M, D)

        # --- residual + LN, feed-forward (ReLU), residual + LN -------------------
        y = _layer_norm(h + attn, g1, be1)
        f = jnp.maximum(jnp.dot(y, w1, preferred_element_type=jnp.float32) + b1, 0.0)
        f = jnp.dot(f, w2, preferred_element_type=jnp.float32) + b2
        h = _layer_norm(y + f, g2, be2)

    o_ref[...] = h


# ------------------------------ wrapper -----------------------------------------

def _vmem_spec():
    return pl.BlockSpec(memory_space=pltpu.MemorySpace.VMEM)


def encoder_forward(x, params):
    """x: (B, S, INP_SIZE) -> (B, S, D_MODEL). Single pallas_call for the whole model."""
    B, S, _ = x.shape
    x2 = x.reshape(B * S, INP_SIZE)
    n_args = 1 + len(params)
    out2 = pl.pallas_call(
        fused_encoder_kernel,
        out_shape=jax.ShapeDtypeStruct((B * S, D_MODEL), jnp.float32),
        in_specs=[_vmem_spec()] * n_args,
        out_specs=_vmem_spec(),
        scratch_shapes=[pltpu.VMEM((B * S, D_MODEL), jnp.float32)],
        # TODO(synk): on v7x with larger batch, add grid=(B,) with
        # dimension_semantics=("parallel",) to use both TensorCores; at B=2 the
        # per-core fixed overhead would eat the gain, so we keep a single call.
    )(x2, *params)
    return out2.reshape(B, S, D_MODEL)


encoder_forward_jit = jax.jit(encoder_forward)


# ------------------------------ parameter init ----------------------------------

def init_params(key):
    """Deterministic init (uniform +-1/sqrt(fan_in), like nn.Linear).

    Returns a flat tuple of arrays matching the kernel argument order (after x):
      mod_w, mod_b, wqkv, bqkv, wo, bo, w1, b1, w2, b2, g1, be1, g2, be2
    where per-layer tensors are stacked on a leading layer axis.
    """
    def linear(k, fan_in, fan_out):
        k1, k2 = jax.random.split(k)
        bound = 1.0 / sqrt(fan_in)
        w = jax.random.uniform(k1, (fan_in, fan_out), jnp.float32, -bound, bound)
        b = jax.random.uniform(k2, (1, fan_out), jnp.float32, -bound, bound)
        return w, b

    keys = jax.random.split(key, 1 + NUM_LAYERS)
    mod_w, mod_b = linear(keys[0], INP_SIZE, D_MODEL)

    wqkv_l, bqkv_l, wo_l, bo_l = [], [], [], []
    w1_l, b1_l, w2_l, b2_l = [], [], [], []
    g1_l, be1_l, g2_l, be2_l = [], [], [], []
    for li in range(NUM_LAYERS):
        lk = jax.random.split(keys[1 + li], 6)
        wq, bq = linear(lk[0], D_MODEL, D_MODEL)
        wk, bk = linear(lk[1], D_MODEL, D_MODEL)
        wv, bv = linear(lk[2], D_MODEL, D_MODEL)
        wo, bo = linear(lk[3], D_MODEL, D_MODEL)
        w1, b1 = linear(lk[4], D_MODEL, DFF)
        w2, b2 = linear(lk[5], DFF, D_MODEL)
        # fuse Q/K/V into one (D, 3D) projection
        wqkv_l.append(jnp.concatenate([wq, wk, wv], axis=1))
        bqkv_l.append(jnp.concatenate([bq, bk, bv], axis=1))
        wo_l.append(wo); bo_l.append(bo)
        w1_l.append(w1); b1_l.append(b1)
        w2_l.append(w2); b2_l.append(b2)
        g1_l.append(jnp.ones((1, D_MODEL), jnp.float32))
        be1_l.append(jnp.zeros((1, D_MODEL), jnp.float32))
        g2_l.append(jnp.ones((1, D_MODEL), jnp.float32))
        be2_l.append(jnp.zeros((1, D_MODEL), jnp.float32))

    stack = lambda xs: jnp.stack(xs, axis=0)
    return (mod_w, mod_b,
            stack(wqkv_l), stack(bqkv_l), stack(wo_l), stack(bo_l),
            stack(w1_l), stack(b1_l), stack(w2_l), stack(b2_l),
            stack(g1_l), stack(be1_l), stack(g2_l), stack(be2_l))


# ------------------------------ pure-JAX reference -------------------------------

def reference_forward(x, params):
    (mod_w, mod_b, wqkv, bqkv, wo, bo, w1, b1, w2, b2,
     g1, be1, g2, be2) = params
    B, S, _ = x.shape
    D, H = D_MODEL, NUM_HEADS
    dh = D // H
    h = x.reshape(B * S, INP_SIZE) @ mod_w + mod_b
    for li in range(NUM_LAYERS):
        qkv = h @ wqkv[li] + bqkv[li]
        q, k, v = qkv[:, :D], qkv[:, D:2 * D], qkv[:, 2 * D:]
        attn = jnp.zeros((B * S, D), jnp.float32)
        for b in range(B):
            rs = slice(b * S, (b + 1) * S)
            for hh in range(H):
                cs = slice(hh * dh, (hh + 1) * dh)
                s = (q[rs, cs] @ k[rs, cs].T) / sqrt(dh)
                p = jax.nn.softmax(s, axis=-1)
                attn = attn.at[rs, cs].set(p @ v[rs, cs])
        attn = attn @ wo[li] + bo[li]
        y = _layer_norm(h + attn, g1[li], be1[li])
        f = jnp.maximum(y @ w1[li] + b1[li], 0.0) @ w2[li] + b2[li]
        h = _layer_norm(y + f, g2[li], be2[li])
    return h.reshape(B, S, D)


if __name__ == "__main__":
    key = jax.random.PRNGKey(0)
    kx, kp = jax.random.split(key)
    x = jax.random.normal(kx, (BATCH, SEQ, INP_SIZE), jnp.float32)
    params = init_params(kp)

    out = encoder_forward_jit(x, params)
    out = jax.block_until_ready(out)

    assert out.shape == (BATCH, SEQ, D_MODEL)
    assert bool(jnp.all(jnp.isfinite(out)))

    ref = reference_forward(x, params)
    assert bool(jnp.allclose(out, ref, rtol=1e-2, atol=1e-2)), \
        float(jnp.max(jnp.abs(out - ref)))

    print("KERNEL_OK")
</pallas_src>

<mosaic_0001>
module attributes {stable_mosaic.version = 11 : i64} {
  func.func @fused_encoder_kernel(%arg0: memref<16x2xf32, #tpu.memory_space<vmem>>, %arg1: memref<2x32xf32, #tpu.memory_space<vmem>>, %arg2: memref<1x32xf32, #tpu.memory_space<vmem>>, %arg3: memref<2x32x96xf32, #tpu.memory_space<vmem>>, %arg4: memref<2x1x96xf32, #tpu.memory_space<vmem>>, %arg5: memref<2x32x32xf32, #tpu.memory_space<vmem>>, %arg6: memref<2x1x32xf32, #tpu.memory_space<vmem>>, %arg7: memref<2x32x64xf32, #tpu.memory_space<vmem>>, %arg8: memref<2x1x64xf32, #tpu.memory_space<vmem>>, %arg9: memref<2x64x32xf32, #tpu.memory_space<vmem>>, %arg10: memref<2x1x32xf32, #tpu.memory_space<vmem>>, %arg11: memref<2x1x32xf32, #tpu.memory_space<vmem>>, %arg12: memref<2x1x32xf32, #tpu.memory_space<vmem>>, %arg13: memref<2x1x32xf32, #tpu.memory_space<vmem>>, %arg14: memref<2x1x32xf32, #tpu.memory_space<vmem>>, %arg15: memref<16x32xf32, #tpu.memory_space<vmem>>, %arg16: memref<16x32xf32, #tpu.memory_space<vmem>>) attributes {dimension_semantics = [], scalar_prefetch = 0 : i64, scratch_operands = 1 : i64, tpu.core_type = #tpu.core_type<tc>} {
    %c0 = arith.constant 0 : index
    %c0_0 = arith.constant 0 : index
    %0 = vector.load %arg0[%c0, %c0_0] : memref<16x2xf32, #tpu.memory_space<vmem>>, vector<16x2xf32>
    %c0_1 = arith.constant 0 : index
    %c0_2 = arith.constant 0 : index
    %1 = vector.load %arg1[%c0_1, %c0_2] : memref<2x32xf32, #tpu.memory_space<vmem>>, vector<2x32xf32>
    %cst = arith.constant dense<0.000000e+00> : vector<16x32xf32>
    %2 = tpu.matmul %0, %1, %cst {dimension_numbers = #tpu.dot_dimension_numbers<[1], [0], [0], [1], [0, 0, 1, 1], [], []>} : vector<16x2xf32>, vector<2x32xf32>, vector<16x32xf32> -> vector<16x32xf32>
    %c0_3 = arith.constant 0 : index
    %c0_4 = arith.constant 0 : index
    %3 = vector.load %arg2[%c0_3, %c0_4] : memref<1x32xf32, #tpu.memory_space<vmem>>, vector<1x32xf32>
    %4 = vector.broadcast %3 : vector<1x32xf32> to vector<16x32xf32>
    %5 = arith.addf %2, %4 : vector<16x32xf32>
    %c0_5 = arith.constant 0 : index
    %c0_6 = arith.constant 0 : index
    %c0_7 = arith.constant 0 : index
    %6 = vector.load %arg3[%c0_5, %c0_6, %c0_7] : memref<2x32x96xf32, #tpu.memory_space<vmem>>, vector<1x32x96xf32>
    %7 = vector.shape_cast %6 : vector<1x32x96xf32> to vector<32x96xf32>
    %c0_8 = arith.constant 0 : index
    %c0_9 = arith.constant 0 : index
    %c0_10 = arith.constant 0 : index
    %8 = vector.load %arg4[%c0_8, %c0_9, %c0_10] : memref<2x1x96xf32, #tpu.memory_space<vmem>>, vector<1x1x96xf32>
    %9 = vector.shape_cast %8 : vector<1x1x96xf32> to vector<1x96xf32>
    %c0_11 = arith.constant 0 : index
    %c0_12 = arith.constant 0 : index
    %c0_13 = arith.constant 0 : index
    %10 = vector.load %arg5[%c0_11, %c0_12, %c0_13] : memref<2x32x32xf32, #tpu.memory_space<vmem>>, vector<1x32x32xf32>
    %11 = vector.shape_cast %10 : vector<1x32x32xf32> to vector<32x32xf32>
    %c0_14 = arith.constant 0 : index
    %c0_15 = arith.constant 0 : index
    %c0_16 = arith.constant 0 : index
    %12 = vector.load %arg6[%c0_14, %c0_15, %c0_16] : memref<2x1x32xf32, #tpu.memory_space<vmem>>, vector<1x1x32xf32>
    %13 = vector.shape_cast %12 : vector<1x1x32xf32> to vector<1x32xf32>
    %c0_17 = arith.constant 0 : index
    %c0_18 = arith.constant 0 : index
    %c0_19 = arith.constant 0 : index
    %14 = vector.load %arg7[%c0_17, %c0_18, %c0_19] : memref<2x32x64xf32, #tpu.memory_space<vmem>>, vector<1x32x64xf32>
    %15 = vector.shape_cast %14 : vector<1x32x64xf32> to vector<32x64xf32>
    %c0_20 = arith.constant 0 : index
    %c0_21 = arith.constant 0 : index
    %c0_22 = arith.constant 0 : index
    %16 = vector.load %arg8[%c0_20, %c0_21, %c0_22] : memref<2x1x64xf32, #tpu.memory_space<vmem>>, vector<1x1x64xf32>
    %17 = vector.shape_cast %16 : vector<1x1x64xf32> to vector<1x64xf32>
    %c0_23 = arith.constant 0 : index
    %c0_24 = arith.constant 0 : index
    %c0_25 = arith.constant 0 : index
    %18 = vector.load %arg9[%c0_23, %c0_24, %c0_25] : memref<2x64x32xf32, #tpu.memory_space<vmem>>, vector<1x64x32xf32>
    %19 = vector.shape_cast %18 : vector<1x64x32xf32> to vector<64x32xf32>
    %c0_26 = arith.constant 0 : index
    %c0_27 = arith.constant 0 : index
    %c0_28 = arith.constant 0 : index
    %20 = vector.load %arg10[%c0_26, %c0_27, %c0_28] : memref<2x1x32xf32, #tpu.memory_space<vmem>>, vector<1x1x32xf32>
    %21 = vector.shape_cast %20 : vector<1x1x32xf32> to vector<1x32xf32>
    %c0_29 = arith.constant 0 : index
    %c0_30 = arith.constant 0 : index
    %c0_31 = arith.constant 0 : index
    %22 = vector.load %arg11[%c0_29, %c0_30, %c0_31] : memref<2x1x32xf32, #tpu.memory_space<vmem>>, vector<1x1x32xf32>
    %23 = vector.shape_cast %22 : vector<1x1x32xf32> to vector<1x32xf32>
    %c0_32 = arith.constant 0 : index
    %c0_33 = arith.constant 0 : index
    %c0_34 = arith.constant 0 : index
    %24 = vector.load %arg12[%c0_32, %c0_33, %c0_34] : memref<2x1x32xf32, #tpu.memory_space<vmem>>, vector<1x1x32xf32>
    %25 = vector.shape_cast %24 : vector<1x1x32xf32> to vector<1x32xf32>
    %c0_35 = arith.constant 0 : index
    %c0_36 = arith.constant 0 : index
    %c0_37 = arith.constant 0 : index
    %26 = vector.load %arg13[%c0_35, %c0_36, %c0_37] : memref<2x1x32xf32, #tpu.memory_space<vmem>>, vector<1x1x32xf32>
    %27 = vector.shape_cast %26 : vector<1x1x32xf32> to vector<1x32xf32>
    %c0_38 = arith.constant 0 : index
    %c0_39 = arith.constant 0 : index
    %c0_40 = arith.constant 0 : index
    %28 = vector.load %arg14[%c0_38, %c0_39, %c0_40] : memref<2x1x32xf32, #tpu.memory_space<vmem>>, vector<1x1x32xf32>
    %29 = vector.shape_cast %28 : vector<1x1x32xf32> to vector<1x32xf32>
    %cst_41 = arith.constant dense<0.000000e+00> : vector<16x96xf32>
    %30 = tpu.matmul %5, %7, %cst_41 {dimension_numbers = #tpu.dot_dimension_numbers<[1], [0], [0], [1], [0, 0, 1, 1], [], []>} : vector<16x32xf32>, vector<32x96xf32>, vector<16x96xf32> -> vector<16x96xf32>
    %31 = vector.broadcast %9 : vector<1x96xf32> to vector<16x96xf32>
    %32 = arith.addf %30, %31 : vector<16x96xf32>
    %33 = vector.extract_strided_slice %32 {offsets = [0, 0], sizes = [16, 32], strides = [1, 1]} : vector<16x96xf32> to vector<16x32xf32>
    %cst_42 = arith.constant 2.500000e-01 : f32
    %34 = vector.broadcast %cst_42 : f32 to vector<16x32xf32>
    %35 = arith.mulf %33, %34 : vector<16x32xf32>
    %36 = vector.extract_strided_slice %32 {offsets = [0, 32], sizes = [16, 32], strides = [1, 1]} : vector<16x96xf32> to vector<16x32xf32>
    %37 = vector.extract_strided_slice %32 {offsets = [0, 64], sizes = [16, 32], strides = [1, 1]} : vector<16x96xf32> to vector<16x32xf32>
    %38 = vector.extract_strided_slice %35 {offsets = [0, 0], sizes = [8, 32], strides = [1, 1]} : vector<16x32xf32> to vector<8x32xf32>
    %39 = vector.extract_strided_slice %36 {offsets = [0, 0], sizes = [8, 32], strides = [1, 1]} : vector<16x32xf32> to vector<8x32xf32>
    %40 = vector.extract_strided_slice %37 {offsets = [0, 0], sizes = [8, 32], strides = [1, 1]} : vector<16x32xf32> to vector<8x32xf32>
    %41 = vector.extract_strided_slice %38 {offsets = [0, 0], sizes = [8, 16], strides = [1, 1]} : vector<8x32xf32> to vector<8x16xf32>
    %42 = vector.extract_strided_slice %39 {offsets = [0, 0], sizes = [8, 16], strides = [1, 1]} : vector<8x32xf32> to vector<8x16xf32>
    %43 = vector.extract_strided_slice %40 {offsets = [0, 0], sizes = [8, 16], strides = [1, 1]} : vector<8x32xf32> to vector<8x16xf32>
    %cst_43 = arith.constant dense<0.000000e+00> : vector<8x8xf32>
    %44 = tpu.matmul %41, %42, %cst_43 {dimension_numbers = #tpu.dot_dimension_numbers<[1], [1], [0], [0], [0, 0, 1, 0], [], []>} : vector<8x16xf32>, vector<8x16xf32>, vector<8x8xf32> -> vector<8x8xf32>
    %cst_44 = arith.constant dense<0xFF800000> : vector<8xf32>
    %45 = vector.multi_reduction <maximumf>, %44, %cst_44 [1] : vector<8x8xf32> to vector<8xf32>
    %46 = vector.shape_cast %45 : vector<8xf32> to vector<8x1xf32>
    %47 = vector.broadcast %46 : vector<8x1xf32> to vector<8x8xf32>
    %48 = arith.subf %44, %47 : vector<8x8xf32>
    %49 = math.exp %48 : vector<8x8xf32>
    %cst_45 = arith.constant dense<0.000000e+00> : vector<8xf32>
    %50 = vector.multi_reduction <add>, %49, %cst_45 [1] : vector<8x8xf32> to vector<8xf32>
    %51 = vector.shape_cast %50 : vector<8xf32> to vector<8x1xf32>
    %52 = tpu.reciprocal %51 {approx = true} : vector<8x1xf32> -> vector<8x1xf32>
    %53 = vector.broadcast %52 : vector<8x1xf32> to vector<8x8xf32>
    %54 = arith.mulf %49, %53 : vector<8x8xf32>
    %cst_46 = arith.constant dense<0.000000e+00> : vector<8x16xf32>
    %55 = tpu.matmul %54, %43, %cst_46 {dimension_numbers = #tpu.dot_dimension_numbers<[1], [0], [0], [1], [0, 0, 1, 1], [], []>} : vector<8x8xf32>, vector<8x16xf32>, vector<8x16xf32> -> vector<8x16xf32>
    %c0_47 = arith.constant 0 : index
    %c0_48 = arith.constant 0 : index
    %56 = vector.load %arg16[%c0_47, %c0_48] : memref<16x32xf32, #tpu.memory_space<vmem>>, vector<8x16xf32>
    tpu.vector_store %arg16[%c0_47, %c0_48], %55 {strides = array<i32>} : memref<16x32xf32, #tpu.memory_space<vmem>>, vector<8x16xf32>,
    %57 = vector.extract_strided_slice %38 {offsets = [0, 16], sizes = [8, 16], strides = [1, 1]} : vector<8x32xf32> to vector<8x16xf32>
    %58 = vector.extract_strided_slice %39 {offsets = [0, 16], sizes = [8, 16], strides = [1, 1]} : vector<8x32xf32> to vector<8x16xf32>
    %59 = vector.extract_strided_slice %40 {offsets = [0, 16], sizes = [8, 16], strides = [1, 1]} : vector<8x32xf32> to vector<8x16xf32>
    %cst_49 = arith.constant dense<0.000000e+00> : vector<8x8xf32>
    %60 = tpu.matmul %57, %58, %cst_49 {dimension_numbers = #tpu.dot_dimension_numbers<[1], [1], [0], [0], [0, 0, 1, 0], [], []>} : vector<8x16xf32>, vector<8x16xf32>, vector<8x8xf32> -> vector<8x8xf32>
    %cst_50 = arith.constant dense<0xFF800000> : vector<8xf32>
    %61 = vector.multi_reduction <maximumf>, %60, %cst_50 [1] : vector<8x8xf32> to vector<8xf32>
    %62 = vector.shape_cast %61 : vector<8xf32> to vector<8x1xf32>
    %63 = vector.broadcast %62 : vector<8x1xf32> to vector<8x8xf32>
    %64 = arith.subf %60, %63 : vector<8x8xf32>
    %65 = math.exp %64 : vector<8x8xf32>
    %cst_51 = arith.constant dense<0.000000e+00> : vector<8xf32>
    %66 = vector.multi_reduction <add>, %65, %cst_51 [1] : vector<8x8xf32> to vector<8xf32>
    %67 = vector.shape_cast %66 : vector<8xf32> to vector<8x1xf32>
    %68 = tpu.reciprocal %67 {approx = true} : vector<8x1xf32> -> vector<8x1xf32>
    %69 = vector.broadcast %68 : vector<8x1xf32> to vector<8x8xf32>
    %70 = arith.mulf %65, %69 : vector<8x8xf32>
    %cst_52 = arith.constant dense<0.000000e+00> : vector<8x16xf32>
    %71 = tpu.matmul %70, %59, %cst_52 {dimension_numbers = #tpu.dot_dimension_numbers<[1], [0], [0], [1], [0, 0, 1, 1], [], []>} : vector<8x8xf32>, vector<8x16xf32>, vector<8x16xf32> -> vector<8x16xf32>
    %c0_53 = arith.constant 0 : index
    %c16 = arith.constant 16 : index
    %72 = vector.load %arg16[%c0_53, %c16] : memref<16x32xf32, #tpu.memory_space<vmem>>, vector<8x16xf32>
    tpu.vector_store %arg16[%c0_53, %c16], %71 {strides = array<i32>} : memref<16x32xf32, #tpu.memory_space<vmem>>, vector<8x16xf32>,
    %73 = vector.extract_strided_slice %35 {offsets = [8, 0], sizes = [8, 32], strides = [1, 1]} : vector<16x32xf32> to vector<8x32xf32>
    %74 = vector.extract_strided_slice %36 {offsets = [8, 0], sizes = [8, 32], strides = [1, 1]} : vector<16x32xf32> to vector<8x32xf32>
    %75 = vector.extract_strided_slice %37 {offsets = [8, 0], sizes = [8, 32], strides = [1, 1]} : vector<16x32xf32> to vector<8x32xf32>
    %76 = vector.extract_strided_slice %73 {offsets = [0, 0], sizes = [8, 16], strides = [1, 1]} : vector<8x32xf32> to vector<8x16xf32>
    %77 = vector.extract_strided_slice %74 {offsets = [0, 0], sizes = [8, 16], strides = [1, 1]} : vector<8x32xf32> to vector<8x16xf32>
    %78 = vector.extract_strided_slice %75 {offsets = [0, 0], sizes = [8, 16], strides = [1, 1]} : vector<8x32xf32> to vector<8x16xf32>
    %cst_54 = arith.constant dense<0.000000e+00> : vector<8x8xf32>
    %79 = tpu.matmul %76, %77, %cst_54 {dimension_numbers = #tpu.dot_dimension_numbers<[1], [1], [0], [0], [0, 0, 1, 0], [], []>} : vector<8x16xf32>, vector<8x16xf32>, vector<8x8xf32> -> vector<8x8xf32>
    %cst_55 = arith.constant dense<0xFF800000> : vector<8xf32>
    %80 = vector.multi_reduction <maximumf>, %79, %cst_55 [1] : vector<8x8xf32> to vector<8xf32>
    %81 = vector.shape_cast %80 : vector<8xf32> to vector<8x1xf32>
    %82 = vector.broadcast %81 : vector<8x1xf32> to vector<8x8xf32>
    %83 = arith.subf %79, %82 : vector<8x8xf32>
    %84 = math.exp %83 : vector<8x8xf32>
    %cst_56 = arith.constant dense<0.000000e+00> : vector<8xf32>
    %85 = vector.multi_reduction <add>, %84, %cst_56 [1] : vector<8x8xf32> to vector<8xf32>
    %86 = vector.shape_cast %85 : vector<8xf32> to vector<8x1xf32>
    %87 = tpu.reciprocal %86 {approx = true} : vector<8x1xf32> -> vector<8x1xf32>
    %88 = vector.broadcast %87 : vector<8x1xf32> to vector<8x8xf32>
    %89 = arith.mulf %84, %88 : vector<8x8xf32>
    %cst_57 = arith.constant dense<0.000000e+00> : vector<8x16xf32>
    %90 = tpu.matmul %89, %78, %cst_57 {dimension_numbers = #tpu.dot_dimension_numbers<[1], [0], [0], [1], [0, 0, 1, 1], [], []>} : vector<8x8xf32>, vector<8x16xf32>, vector<8x16xf32> -> vector<8x16xf32>
    %c8 = arith.constant 8 : index
    %c0_58 = arith.constant 0 : index
    %91 = vector.load %arg16[%c8, %c0_58] : memref<16x32xf32, #tpu.memory_space<vmem>>, vector<8x16xf32>
    tpu.vector_store %arg16[%c8, %c0_58], %90 {strides = array<i32>} : memref<16x32xf32, #tpu.memory_space<vmem>>, vector<8x16xf32>,
    %92 = vector.extract_strided_slice %73 {offsets = [0, 16], sizes = [8, 16], strides = [1, 1]} : vector<8x32xf32> to vector<8x16xf32>
    %93 = vector.extract_strided_slice %74 {offsets = [0, 16], sizes = [8, 16], strides = [1, 1]} : vector<8x32xf32> to vector<8x16xf32>
    %94 = vector.extract_strided_slice %75 {offsets = [0, 16], sizes = [8, 16], strides = [1, 1]} : vector<8x32xf32> to vector<8x16xf32>
    %cst_59 = arith.constant dense<0.000000e+00> : vector<8x8xf32>
    %95 = tpu.matmul %92, %93, %cst_59 {dimension_numbers = #tpu.dot_dimension_numbers<[1], [1], [0], [0], [0, 0, 1, 0], [], []>} : vector<8x16xf32>, vector<8x16xf32>, vector<8x8xf32> -> vector<8x8xf32>
    %cst_60 = arith.constant dense<0xFF800000> : vector<8xf32>
    %96 = vector.multi_reduction <maximumf>, %95, %cst_60 [1] : vector<8x8xf32> to vector<8xf32>
    %97 = vector.shape_cast %96 : vector<8xf32> to vector<8x1xf32>
    %98 = vector.broadcast %97 : vector<8x1xf32> to vector<8x8xf32>
    %99 = arith.subf %95, %98 : vector<8x8xf32>
    %100 = math.exp %99 : vector<8x8xf32>
    %cst_61 = arith.constant dense<0.000000e+00> : vector<8xf32>
    %101 = vector.multi_reduction <add>, %100, %cst_61 [1] : vector<8x8xf32> to vector<8xf32>
    %102 = vector.shape_cast %101 : vector<8xf32> to vector<8x1xf32>
    %103 = tpu.reciprocal %102 {approx = true} : vector<8x1xf32> -> vector<8x1xf32>
    %104 = vector.broadcast %103 : vector<8x1xf32> to vector<8x8xf32>
    %105 = arith.mulf %100, %104 : vector<8x8xf32>
    %cst_62 = arith.constant dense<0.000000e+00> : vector<8x16xf32>
    %106 = tpu.matmul %105, %94, %cst_62 {dimension_numbers = #tpu.dot_dimension_numbers<[1], [0], [0], [1], [0, 0, 1, 1], [], []>} : vector<8x8xf32>, vector<8x16xf32>, vector<8x16xf32> -> vector<8x16xf32>
    %c8_63 = arith.constant 8 : index
    %c16_64 = arith.constant 16 : index
    %107 = vector.load %arg16[%c8_63, %c16_64] : memref<16x32xf32, #tpu.memory_space<vmem>>, vector<8x16xf32>
    tpu.vector_store %arg16[%c8_63, %c16_64], %106 {strides = array<i32>} : memref<16x32xf32, #tpu.memory_space<vmem>>, vector<8x16xf32>,
    %c0_65 = arith.constant 0 : index
    %c0_66 = arith.constant 0 : index
    %108 = vector.load %arg16[%c0_65, %c0_66] : memref<16x32xf32, #tpu.memory_space<vmem>>, vector<16x32xf32>
    %cst_67 = arith.constant dense<0.000000e+00> : vector<16x32xf32>
    %109 = tpu.matmul %108, %11, %cst_67 {dimension_numbers = #tpu.dot_dimension_numbers<[1], [0], [0], [1], [0, 0, 1, 1], [], []>} : vector<16x32xf32>, vector<32x32xf32>, vector<16x32xf32> -> vector<16x32xf32>
    %110 = vector.broadcast %13 : vector<1x32xf32> to vector<16x32xf32>
    %111 = arith.addf %109, %110 : vector<16x32xf32>
    %112 = arith.addf %5, %111 : vector<16x32xf32>
    %cst_68 = arith.constant dense<0.000000e+00> : vector<16xf32>
    %113 = vector.multi_reduction <add>, %112, %cst_68 [1] : vector<16x32xf32> to vector<16xf32>
    %114 = vector.shape_cast %113 : vector<16xf32> to vector<16x1xf32>
    %cst_69 = arith.constant 3.200000e+01 : f32
    %115 = vector.broadcast %cst_69 : f32 to vector<16x1xf32>
    %116 = arith.divf %114, %115 : vector<16x1xf32>
    %117 = vector.broadcast %116 : vector<16x1xf32> to vector<16x32xf32>
    %118 = arith.subf %112, %117 : vector<16x32xf32>
    %119 = arith.mulf %118, %118 : vector<16x32xf32>
    %cst_70 = arith.constant dense<0.000000e+00> : vector<16xf32>
    %120 = vector.multi_reduction <add>, %119, %cst_70 [1] : vector<16x32xf32> to vector<16xf32>
    %121 = vector.shape_cast %120 : vector<16xf32> to vector<16x1xf32>
    %cst_71 = arith.constant 3.200000e+01 : f32
    %122 = vector.broadcast %cst_71 : f32 to vector<16x1xf32>
    %123 = arith.divf %121, %122 : vector<16x1xf32>
    %cst_72 = arith.constant 9.99999974E-6 : f32
    %124 = vector.broadcast %cst_72 : f32 to vector<16x1xf32>
    %125 = arith.addf %123, %124 : vector<16x1xf32>
    %126 = math.rsqrt %125 : vector<16x1xf32>
    %127 = vector.broadcast %126 : vector<16x1xf32> to vector<16x32xf32>
    %128 = arith.mulf %118, %127 : vector<16x32xf32>
    %129 = vector.broadcast %23 : vector<1x32xf32> to vector<16x32xf32>
    %130 = arith.mulf %128, %129 : vector<16x32xf32>
    %131 = vector.broadcast %25 : vector<1x32xf32> to vector<16x32xf32>
    %132 = arith.addf %130, %131 : vector<16x32xf32>
    %cst_73 = arith.constant dense<0.000000e+00> : vector<16x64xf32>
    %133 = tpu.matmul %132, %15, %cst_73 {dimension_numbers = #tpu.dot_dimension_numbers<[1], [0], [0], [1], [0, 0, 1, 1], [], []>} : vector<16x32xf32>, vector<32x64xf32>, vector<16x64xf32> -> vector<16x64xf32>
    %134 = vector.broadcast %17 : vector<1x64xf32> to vector<16x64xf32>
    %135 = arith.addf %133, %134 : vector<16x64xf32>
    %cst_74 = arith.constant 0.000000e+00 : f32
    %136 = vector.broadcast %cst_74 : f32 to vector<16x64xf32>
    %137 = arith.maximumf %135, %136 : vector<16x64xf32>
    %cst_75 = arith.constant dense<0.000000e+00> : vector<16x32xf32>
    %138 = tpu.matmul %137, %19, %cst_75 {dimension_numbers = #tpu.dot_dimension_numbers<[1], [0], [0], [1], [0, 0, 1, 1], [], []>} : vector<16x64xf32>, vector<64x32xf32>, vector<16x32xf32> -> vector<16x32xf32>
    %139 = vector.broadcast %21 : vector<1x32xf32> to vector<16x32xf32>
    %140 = arith.addf %138, %139 : vector<16x32xf32>
    %141 = arith.addf %132, %140 : vector<16x32xf32>
    %cst_76 = arith.constant dense<0.000000e+00> : vector<16xf32>
    %142 = vector.multi_reduction <add>, %141, %cst_76 [1] : vector<16x32xf32> to vector<16xf32>
    %143 = vector.shape_cast %142 : vector<16xf32> to vector<16x1xf32>
    %cst_77 = arith.constant 3.200000e+01 : f32
    %144 = vector.broadcast %cst_77 : f32 to vector<16x1xf32>
    %145 = arith.divf %143, %144 : vector<16x1xf32>
    %146 = vector.broadcast %145 : vector<16x1xf32> to vector<16x32xf32>
    %147 = arith.subf %141, %146 : vector<16x32xf32>
    %148 = arith.mulf %147, %147 : vector<16x32xf32>
    %cst_78 = arith.constant dense<0.000000e+00> : vector<16xf32>
    %149 = vector.multi_reduction <add>, %148, %cst_78 [1] : vector<16x32xf32> to vector<16xf32>
    %150 = vector.shape_cast %149 : vector<16xf32> to vector<16x1xf32>
    %cst_79 = arith.constant 3.200000e+01 : f32
    %151 = vector.broadcast %cst_79 : f32 to vector<16x1xf32>
    %152 = arith.divf %150, %151 : vector<16x1xf32>
    %cst_80 = arith.constant 9.99999974E-6 : f32
    %153 = vector.broadcast %cst_80 : f32 to vector<16x1xf32>
    %154 = arith.addf %152, %153 : vector<16x1xf32>
    %155 = math.rsqrt %154 : vector<16x1xf32>
    %156 = vector.broadcast %155 : vector<16x1xf32> to vector<16x32xf32>
    %157 = arith.mulf %147, %156 : vector<16x32xf32>
    %158 = vector.broadcast %27 : vector<1x32xf32> to vector<16x32xf32>
    %159 = arith.mulf %157, %158 : vector<16x32xf32>
    %160 = vector.broadcast %29 : vector<1x32xf32> to vector<16x32xf32>
    %161 = arith.addf %159, %160 : vector<16x32xf32>
    %c1 = arith.constant 1 : index
    %c0_81 = arith.constant 0 : index
    %c0_82 = arith.constant 0 : index
    %162 = vector.load %arg3[%c1, %c0_81, %c0_82] : memref<2x32x96xf32, #tpu.memory_space<vmem>>, vector<1x32x96xf32>
    %163 = vector.shape_cast %162 : vector<1x32x96xf32> to vector<32x96xf32>
    %c1_83 = arith.constant 1 : index
    %c0_84 = arith.constant 0 : index
    %c0_85 = arith.constant 0 : index
    %164 = vector.load %arg4[%c1_83, %c0_84, %c0_85] : memref<2x1x96xf32, #tpu.memory_space<vmem>>, vector<1x1x96xf32>
    %165 = vector.shape_cast %164 : vector<1x1x96xf32> to vector<1x96xf32>
    %c1_86 = arith.constant 1 : index
    %c0_87 = arith.constant 0 : index
    %c0_88 = arith.constant 0 : index
    %166 = vector.load %arg5[%c1_86, %c0_87, %c0_88] : memref<2x32x32xf32, #tpu.memory_space<vmem>>, vector<1x32x32xf32>
    %167 = vector.shape_cast %166 : vector<1x32x32xf32> to vector<32x32xf32>
    %c1_89 = arith.constant 1 : index
    %c0_90 = arith.constant 0 : index
    %c0_91 = arith.constant 0 : index
    %168 = vector.load %arg6[%c1_89, %c0_90, %c0_91] : memref<2x1x32xf32, #tpu.memory_space<vmem>>, vector<1x1x32xf32>
    %169 = vector.shape_cast %168 : vector<1x1x32xf32> to vector<1x32xf32>
    %c1_92 = arith.constant 1 : index
    %c0_93 = arith.constant 0 : index
    %c0_94 = arith.constant 0 : index
    %170 = vector.load %arg7[%c1_92, %c0_93, %c0_94] : memref<2x32x64xf32, #tpu.memory_space<vmem>>, vector<1x32x64xf32>
    %171 = vector.shape_cast %170 : vector<1x32x64xf32> to vector<32x64xf32>
    %c1_95 = arith.constant 1 : index
    %c0_96 = arith.constant 0 : index
    %c0_97 = arith.constant 0 : index
    %172 = vector.load %arg8[%c1_95, %c0_96, %c0_97] : memref<2x1x64xf32, #tpu.memory_space<vmem>>, vector<1x1x64xf32>
    %173 = vector.shape_cast %172 : vector<1x1x64xf32> to vector<1x64xf32>
    %c1_98 = arith.constant 1 : index
    %c0_99 = arith.constant 0 : index
    %c0_100 = arith.constant 0 : index
    %174 = vector.load %arg9[%c1_98, %c0_99, %c0_100] : memref<2x64x32xf32, #tpu.memory_space<vmem>>, vector<1x64x32xf32>
    %175 = vector.shape_cast %174 : vector<1x64x32xf32> to vector<64x32xf32>
    %c1_101 = arith.constant 1 : index
    %c0_102 = arith.constant 0 : index
    %c0_103 = arith.constant 0 : index
    %176 = vector.load %arg10[%c1_101, %c0_102, %c0_103] : memref<2x1x32xf32, #tpu.memory_space<vmem>>, vector<1x1x32xf32>
    %177 = vector.shape_cast %176 : vector<1x1x32xf32> to vector<1x32xf32>
    %c1_104 = arith.constant 1 : index
    %c0_105 = arith.constant 0 : index
    %c0_106 = arith.constant 0 : index
    %178 = vector.load %arg11[%c1_104, %c0_105, %c0_106] : memref<2x1x32xf32, #tpu.memory_space<vmem>>, vector<1x1x32xf32>
    %179 = vector.shape_cast %178 : vector<1x1x32xf32> to vector<1x32xf32>
    %c1_107 = arith.constant 1 : index
    %c0_108 = arith.constant 0 : index
    %c0_109 = arith.constant 0 : index
    %180 = vector.load %arg12[%c1_107, %c0_108, %c0_109] : memref<2x1x32xf32, #tpu.memory_space<vmem>>, vector<1x1x32xf32>
    %181 = vector.shape_cast %180 : vector<1x1x32xf32> to vector<1x32xf32>
    %c1_110 = arith.constant 1 : index
    %c0_111 = arith.constant 0 : index
    %c0_112 = arith.constant 0 : index
    %182 = vector.load %arg13[%c1_110, %c0_111, %c0_112] : memref<2x1x32xf32, #tpu.memory_space<vmem>>, vector<1x1x32xf32>
    %183 = vector.shape_cast %182 : vector<1x1x32xf32> to vector<1x32xf32>
    %c1_113 = arith.constant 1 : index
    %c0_114 = arith.constant 0 : index
    %c0_115 = arith.constant 0 : index
    %184 = vector.load %arg14[%c1_113, %c0_114, %c0_115] : memref<2x1x32xf32, #tpu.memory_space<vmem>>, vector<1x1x32xf32>
    %185 = vector.shape_cast %184 : vector<1x1x32xf32> to vector<1x32xf32>
    %cst_116 = arith.constant dense<0.000000e+00> : vector<16x96xf32>
    %186 = tpu.matmul %161, %163, %cst_116 {dimension_numbers = #tpu.dot_dimension_numbers<[1], [0], [0], [1], [0, 0, 1, 1], [], []>} : vector<16x32xf32>, vector<32x96xf32>, vector<16x96xf32> -> vector<16x96xf32>
    %187 = vector.broadcast %165 : vector<1x96xf32> to vector<16x96xf32>
    %188 = arith.addf %186, %187 : vector<16x96xf32>
    %189 = vector.extract_strided_slice %188 {offsets = [0, 0], sizes = [16, 32], strides = [1, 1]} : vector<16x96xf32> to vector<16x32xf32>
    %cst_117 = arith.constant 2.500000e-01 : f32
    %190 = vector.broadcast %cst_117 : f32 to vector<16x32xf32>
    %191 = arith.mulf %189, %190 : vector<16x32xf32>
    %192 = vector.extract_strided_slice %188 {offsets = [0, 32], sizes = [16, 32], strides = [1, 1]} : vector<16x96xf32> to vector<16x32xf32>
    %193 = vector.extract_strided_slice %188 {offsets = [0, 64], sizes = [16, 32], strides = [1, 1]} : vector<16x96xf32> to vector<16x32xf32>
    %194 = vector.extract_strided_slice %191 {offsets = [0, 0], sizes = [8, 32], strides = [1, 1]} : vector<16x32xf32> to vector<8x32xf32>
    %195 = vector.extract_strided_slice %192 {offsets = [0, 0], sizes = [8, 32], strides = [1, 1]} : vector<16x32xf32> to vector<8x32xf32>
    %196 = vector.extract_strided_slice %193 {offsets = [0, 0], sizes = [8, 32], strides = [1, 1]} : vector<16x32xf32> to vector<8x32xf32>
    %197 = vector.extract_strided_slice %194 {offsets = [0, 0], sizes = [8, 16], strides = [1, 1]} : vector<8x32xf32> to vector<8x16xf32>
    %198 = vector.extract_strided_slice %195 {offsets = [0, 0], sizes = [8, 16], strides = [1, 1]} : vector<8x32xf32> to vector<8x16xf32>
    %199 = vector.extract_strided_slice %196 {offsets = [0, 0], sizes = [8, 16], strides = [1, 1]} : vector<8x32xf32> to vector<8x16xf32>
    %cst_118 = arith.constant dense<0.000000e+00> : vector<8x8xf32>
    %200 = tpu.matmul %197, %198, %cst_118 {dimension_numbers = #tpu.dot_dimension_numbers<[1], [1], [0], [0], [0, 0, 1, 0], [], []>} : vector<8x16xf32>, vector<8x16xf32>, vector<8x8xf32> -> vector<8x8xf32>
    %cst_119 = arith.constant dense<0xFF800000> : vector<8xf32>
    %201 = vector.multi_reduction <maximumf>, %200, %cst_119 [1] : vector<8x8xf32> to vector<8xf32>
    %202 = vector.shape_cast %201 : vector<8xf32> to vector<8x1xf32>
    %203 = vector.broadcast %202 : vector<8x1xf32> to vector<8x8xf32>
    %204 = arith.subf %200, %203 : vector<8x8xf32>
    %205 = math.exp %204 : vector<8x8xf32>
    %cst_120 = arith.constant dense<0.000000e+00> : vector<8xf32>
    %206 = vector.multi_reduction <add>, %205, %cst_120 [1] : vector<8x8xf32> to vector<8xf32>
    %207 = vector.shape_cast %206 : vector<8xf32> to vector<8x1xf32>
    %208 = tpu.reciprocal %207 {approx = true} : vector<8x1xf32> -> vector<8x1xf32>
    %209 = vector.broadcast %208 : vector<8x1xf32> to vector<8x8xf32>
    %210 = arith.mulf %205, %209 : vector<8x8xf32>
    %cst_121 = arith.constant dense<0.000000e+00> : vector<8x16xf32>
    %211 = tpu.matmul %210, %199, %cst_121 {dimension_numbers = #tpu.dot_dimension_numbers<[1], [0], [0], [1], [0, 0, 1, 1], [], []>} : vector<8x8xf32>, vector<8x16xf32>, vector<8x16xf32> -> vector<8x16xf32>
    %c0_122 = arith.constant 0 : index
    %c0_123 = arith.constant 0 : index
    %212 = vector.load %arg16[%c0_122, %c0_123] : memref<16x32xf32, #tpu.memory_space<vmem>>, vector<8x16xf32>
    tpu.vector_store %arg16[%c0_122, %c0_123], %211 {strides = array<i32>} : memref<16x32xf32, #tpu.memory_space<vmem>>, vector<8x16xf32>,
    %213 = vector.extract_strided_slice %194 {offsets = [0, 16], sizes = [8, 16], strides = [1, 1]} : vector<8x32xf32> to vector<8x16xf32>
    %214 = vector.extract_strided_slice %195 {offsets = [0, 16], sizes = [8, 16], strides = [1, 1]} : vector<8x32xf32> to vector<8x16xf32>
    %215 = vector.extract_strided_slice %196 {offsets = [0, 16], sizes = [8, 16], strides = [1, 1]} : vector<8x32xf32> to vector<8x16xf32>
    %cst_124 = arith.constant dense<0.000000e+00> : vector<8x8xf32>
    %216 = tpu.matmul %213, %214, %cst_124 {dimension_numbers = #tpu.dot_dimension_numbers<[1], [1], [0], [0], [0, 0, 1, 0], [], []>} : vector<8x16xf32>, vector<8x16xf32>, vector<8x8xf32> -> vector<8x8xf32>
    %cst_125 = arith.constant dense<0xFF800000> : vector<8xf32>
    %217 = vector.multi_reduction <maximumf>, %216, %cst_125 [1] : vector<8x8xf32> to vector<8xf32>
    %218 = vector.shape_cast %217 : vector<8xf32> to vector<8x1xf32>
    %219 = vector.broadcast %218 : vector<8x1xf32> to vector<8x8xf32>
    %220 = arith.subf %216, %219 : vector<8x8xf32>
    %221 = math.exp %220 : vector<8x8xf32>
    %cst_126 = arith.constant dense<0.000000e+00> : vector<8xf32>
    %222 = vector.multi_reduction <add>, %221, %cst_126 [1] : vector<8x8xf32> to vector<8xf32>
    %223 = vector.shape_cast %222 : vector<8xf32> to vector<8x1xf32>
    %224 = tpu.reciprocal %223 {approx = true} : vector<8x1xf32> -> vector<8x1xf32>
    %225 = vector.broadcast %224 : vector<8x1xf32> to vector<8x8xf32>
    %226 = arith.mulf %221, %225 : vector<8x8xf32>
    %cst_127 = arith.constant dense<0.000000e+00> : vector<8x16xf32>
    %227 = tpu.matmul %226, %215, %cst_127 {dimension_numbers = #tpu.dot_dimension_numbers<[1], [0], [0], [1], [0, 0, 1, 1], [], []>} : vector<8x8xf32>, vector<8x16xf32>, vector<8x16xf32> -> vector<8x16xf32>
    %c0_128 = arith.constant 0 : index
    %c16_129 = arith.constant 16 : index
    %228 = vector.load %arg16[%c0_128, %c16_129] : memref<16x32xf32, #tpu.memory_space<vmem>>, vector<8x16xf32>
    tpu.vector_store %arg16[%c0_128, %c16_129], %227 {strides = array<i32>} : memref<16x32xf32, #tpu.memory_space<vmem>>, vector<8x16xf32>,
    %229 = vector.extract_strided_slice %191 {offsets = [8, 0], sizes = [8, 32], strides = [1, 1]} : vector<16x32xf32> to vector<8x32xf32>
    %230 = vector.extract_strided_slice %192 {offsets = [8, 0], sizes = [8, 32], strides = [1, 1]} : vector<16x32xf32> to vector<8x32xf32>
    %231 = vector.extract_strided_slice %193 {offsets = [8, 0], sizes = [8, 32], strides = [1, 1]} : vector<16x32xf32> to vector<8x32xf32>
    %232 = vector.extract_strided_slice %229 {offsets = [0, 0], sizes = [8, 16], strides = [1, 1]} : vector<8x32xf32> to vector<8x16xf32>
    %233 = vector.extract_strided_slice %230 {offsets = [0, 0], sizes = [8, 16], strides = [1, 1]} : vector<8x32xf32> to vector<8x16xf32>
    %234 = vector.extract_strided_slice %231 {offsets = [0, 0], sizes = [8, 16], strides = [1, 1]} : vector<8x32xf32> to vector<8x16xf32>
    %cst_130 = arith.constant dense<0.000000e+00> : vector<8x8xf32>
    %235 = tpu.matmul %232, %233, %cst_130 {dimension_numbers = #tpu.dot_dimension_numbers<[1], [1], [0], [0], [0, 0, 1, 0], [], []>} : vector<8x16xf32>, vector<8x16xf32>, vector<8x8xf32> -> vector<8x8xf32>
    %cst_131 = arith.constant dense<0xFF800000> : vector<8xf32>
    %236 = vector.multi_reduction <maximumf>, %235, %cst_131 [1] : vector<8x8xf32> to vector<8xf32>
    %237 = vector.shape_cast %236 : vector<8xf32> to vector<8x1xf32>
    %238 = vector.broadcast %237 : vector<8x1xf32> to vector<8x8xf32>
    %239 = arith.subf %235, %238 : vector<8x8xf32>
    %240 = math.exp %239 : vector<8x8xf32>
    %cst_132 = arith.constant dense<0.000000e+00> : vector<8xf32>
    %241 = vector.multi_reduction <add>, %240, %cst_132 [1] : vector<8x8xf32> to vector<8xf32>
    %242 = vector.shape_cast %241 : vector<8xf32> to vector<8x1xf32>
    %243 = tpu.reciprocal %242 {approx = true} : vector<8x1xf32> -> vector<8x1xf32>
    %244 = vector.broadcast %243 : vector<8x1xf32> to vector<8x8xf32>
    %245 = arith.mulf %240, %244 : vector<8x8xf32>
    %cst_133 = arith.constant dense<0.000000e+00> : vector<8x16xf32>
    %246 = tpu.matmul %245, %234, %cst_133 {dimension_numbers = #tpu.dot_dimension_numbers<[1], [0], [0], [1], [0, 0, 1, 1], [], []>} : vector<8x8xf32>, vector<8x16xf32>, vector<8x16xf32> -> vector<8x16xf32>
    %c8_134 = arith.constant 8 : index
    %c0_135 = arith.constant 0 : index
    %247 = vector.load %arg16[%c8_134, %c0_135] : memref<16x32xf32, #tpu.memory_space<vmem>>, vector<8x16xf32>
    tpu.vector_store %arg16[%c8_134, %c0_135], %246 {strides = array<i32>} : memref<16x32xf32, #tpu.memory_space<vmem>>, vector<8x16xf32>,
    %248 = vector.extract_strided_slice %229 {offsets = [0, 16], sizes = [8, 16], strides = [1, 1]} : vector<8x32xf32> to vector<8x16xf32>
    %249 = vector.extract_strided_slice %230 {offsets = [0, 16], sizes = [8, 16], strides = [1, 1]} : vector<8x32xf32> to vector<8x16xf32>
    %250 = vector.extract_strided_slice %231 {offsets = [0, 16], sizes = [8, 16], strides = [1, 1]} : vector<8x32xf32> to vector<8x16xf32>
    %cst_136 = arith.constant dense<0.000000e+00> : vector<8x8xf32>
    %251 = tpu.matmul %248, %249, %cst_136 {dimension_numbers = #tpu.dot_dimension_numbers<[1], [1], [0], [0], [0, 0, 1, 0], [], []>} : vector<8x16xf32>, vector<8x16xf32>, vector<8x8xf32> -> vector<8x8xf32>
    %cst_137 = arith.constant dense<0xFF800000> : vector<8xf32>
    %252 = vector.multi_reduction <maximumf>, %251, %cst_137 [1] : vector<8x8xf32> to vector<8xf32>
    %253 = vector.shape_cast %252 : vector<8xf32> to vector<8x1xf32>
    %254 = vector.broadcast %253 : vector<8x1xf32> to vector<8x8xf32>
    %255 = arith.subf %251, %254 : vector<8x8xf32>
    %256 = math.exp %255 : vector<8x8xf32>
    %cst_138 = arith.constant dense<0.000000e+00> : vector<8xf32>
    %257 = vector.multi_reduction <add>, %256, %cst_138 [1] : vector<8x8xf32> to vector<8xf32>
    %258 = vector.shape_cast %257 : vector<8xf32> to vector<8x1xf32>
    %259 = tpu.reciprocal %258 {approx = true} : vector<8x1xf32> -> vector<8x1xf32>
    %260 = vector.broadcast %259 : vector<8x1xf32> to vector<8x8xf32>
    %261 = arith.mulf %256, %260 : vector<8x8xf32>
    %cst_139 = arith.constant dense<0.000000e+00> : vector<8x16xf32>
    %262 = tpu.matmul %261, %250, %cst_139 {dimension_numbers = #tpu.dot_dimension_numbers<[1], [0], [0], [1], [0, 0, 1, 1], [], []>} : vector<8x8xf32>, vector<8x16xf32>, vector<8x16xf32> -> vector<8x16xf32>
    %c8_140 = arith.constant 8 : index
    %c16_141 = arith.constant 16 : index
    %263 = vector.load %arg16[%c8_140, %c16_141] : memref<16x32xf32, #tpu.memory_space<vmem>>, vector<8x16xf32>
    tpu.vector_store %arg16[%c8_140, %c16_141], %262 {strides = array<i32>} : memref<16x32xf32, #tpu.memory_space<vmem>>, vector<8x16xf32>,
    %c0_142 = arith.constant 0 : index
    %c0_143 = arith.constant 0 : index
    %264 = vector.load %arg16[%c0_142, %c0_143] : memref<16x32xf32, #tpu.memory_space<vmem>>, vector<16x32xf32>
    %cst_144 = arith.constant dense<0.000000e+00> : vector<16x32xf32>
    %265 = tpu.matmul %264, %167, %cst_144 {dimension_numbers = #tpu.dot_dimension_numbers<[1], [0], [0], [1], [0, 0, 1, 1], [], []>} : vector<16x32xf32>, vector<32x32xf32>, vector<16x32xf32> -> vector<16x32xf32>
    %266 = vector.broadcast %169 : vector<1x32xf32> to vector<16x32xf32>
    %267 = arith.addf %265, %266 : vector<16x32xf32>
    %268 = arith.addf %161, %267 : vector<16x32xf32>
    %cst_145 = arith.constant dense<0.000000e+00> : vector<16xf32>
    %269 = vector.multi_reduction <add>, %268, %cst_145 [1] : vector<16x32xf32> to vector<16xf32>
    %270 = vector.shape_cast %269 : vector<16xf32> to vector<16x1xf32>
    %cst_146 = arith.constant 3.200000e+01 : f32
    %271 = vector.broadcast %cst_146 : f32 to vector<16x1xf32>
    %272 = arith.divf %270, %271 : vector<16x1xf32>
    %273 = vector.broadcast %272 : vector<16x1xf32> to vector<16x32xf32>
    %274 = arith.subf %268, %273 : vector<16x32xf32>
    %275 = arith.mulf %274, %274 : vector<16x32xf32>
    %cst_147 = arith.constant dense<0.000000e+00> : vector<16xf32>
    %276 = vector.multi_reduction <add>, %275, %cst_147 [1] : vector<16x32xf32> to vector<16xf32>
    %277 = vector.shape_cast %276 : vector<16xf32> to vector<16x1xf32>
    %cst_148 = arith.constant 3.200000e+01 : f32
    %278 = vector.broadcast %cst_148 : f32 to vector<16x1xf32>
    %279 = arith.divf %277, %278 : vector<16x1xf32>
    %cst_149 = arith.constant 9.99999974E-6 : f32
    %280 = vector.broadcast %cst_149 : f32 to vector<16x1xf32>
    %281 = arith.addf %279, %280 : vector<16x1xf32>
    %282 = math.rsqrt %281 : vector<16x1xf32>
    %283 = vector.broadcast %282 : vector<16x1xf32> to vector<16x32xf32>
    %284 = arith.mulf %274, %283 : vector<16x32xf32>
    %285 = vector.broadcast %179 : vector<1x32xf32> to vector<16x32xf32>
    %286 = arith.mulf %284, %285 : vector<16x32xf32>
    %287 = vector.broadcast %181 : vector<1x32xf32> to vector<16x32xf32>
    %288 = arith.addf %286, %287 : vector<16x32xf32>
    %cst_150 = arith.constant dense<0.000000e+00> : vector<16x64xf32>
    %289 = tpu.matmul %288, %171, %cst_150 {dimension_numbers = #tpu.dot_dimension_numbers<[1], [0], [0], [1], [0, 0, 1, 1], [], []>} : vector<16x32xf32>, vector<32x64xf32>, vector<16x64xf32> -> vector<16x64xf32>
    %290 = vector.broadcast %173 : vector<1x64xf32> to vector<16x64xf32>
    %291 = arith.addf %289, %290 : vector<16x64xf32>
    %cst_151 = arith.constant 0.000000e+00 : f32
    %292 = vector.broadcast %cst_151 : f32 to vector<16x64xf32>
    %293 = arith.maximumf %291, %292 : vector<16x64xf32>
    %cst_152 = arith.constant dense<0.000000e+00> : vector<16x32xf32>
    %294 = tpu.matmul %293, %175, %cst_152 {dimension_numbers = #tpu.dot_dimension_numbers<[1], [0], [0], [1], [0, 0, 1, 1], [], []>} : vector<16x64xf32>, vector<64x32xf32>, vector<16x32xf32> -> vector<16x32xf32>
    %295 = vector.broadcast %177 : vector<1x32xf32> to vector<16x32xf32>
    %296 = arith.addf %294, %295 : vector<16x32xf32>
    %297 = arith.addf %288, %296 : vector<16x32xf32>
    %cst_153 = arith.constant dense<0.000000e+00> : vector<16xf32>
    %298 = vector.multi_reduction <add>, %297, %cst_153 [1] : vector<16x32xf32> to vector<16xf32>
    %299 = vector.shape_cast %298 : vector<16xf32> to vector<16x1xf32>
    %cst_154 = arith.constant 3.200000e+01 : f32
    %300 = vector.broadcast %cst_154 : f32 to vector<16x1xf32>
    %301 = arith.divf %299, %300 : vector<16x1xf32>
    %302 = vector.broadcast %301 : vector<16x1xf32> to vector<16x32xf32>
    %303 = arith.subf %297, %302 : vector<16x32xf32>
    %304 = arith.mulf %303, %303 : vector<16x32xf32>
    %cst_155 = arith.constant dense<0.000000e+00> : vector<16xf32>
    %305 = vector.multi_reduction <add>, %304, %cst_155 [1] : vector<16x32xf32> to vector<16xf32>
    %306 = vector.shape_cast %305 : vector<16xf32> to vector<16x1xf32>
    %cst_156 = arith.constant 3.200000e+01 : f32
    %307 = vector.broadcast %cst_156 : f32 to vector<16x1xf32>
    %308 = arith.divf %306, %307 : vector<16x1xf32>
    %cst_157 = arith.constant 9.99999974E-6 : f32
    %309 = vector.broadcast %cst_157 : f32 to vector<16x1xf32>
    %310 = arith.addf %308, %309 : vector<16x1xf32>
    %311 = math.rsqrt %310 : vector<16x1xf32>
    %312 = vector.broadcast %311 : vector<16x1xf32> to vector<16x32xf32>
    %313 = arith.mulf %303, %312 : vector<16x32xf32>
    %314 = vector.broadcast %183 : vector<1x32xf32> to vector<16x32xf32>
    %315 = arith.mulf %313, %314 : vector<16x32xf32>
    %316 = vector.broadcast %185 : vector<1x32xf32> to vector<16x32xf32>
    %317 = arith.addf %315, %316 : vector<16x32xf32>
    %c0_158 = arith.constant 0 : index
    %c0_159 = arith.constant 0 : index
    %318 = vector.load %arg15[%c0_158, %c0_159] : memref<16x32xf32, #tpu.memory_space<vmem>>, vector<16x32xf32>
    tpu.vector_store %arg15[%c0_158, %c0_159], %317 {strides = array<i32>} : memref<16x32xf32, #tpu.memory_space<vmem>>, vector<16x32xf32>,
    return
  }
}

</mosaic_0001>

<bundles_post_ra>
// kernel: encoder_forward.1
= control target key start
LH: loop header
LB: loop body
LE: loop exit
PB: predicated region body
PF: predicated region fallthrough
CT: control target
= control target key end

     0   :  { %vm65_vm0 = vcmask 1041408   ;;  %vm58_vm1 = vcmask 15360   ;;  %s1854_s0 = inlined_call_operand.vmem [shape: f32[16,2], index: 0, kind: input, shape index: {}]   ;;  %s1855_s1 = inlined_call_operand.vmem [shape: f32[2,32], index: 1, kind: input, shape index: {}]   ;;  %s1856_s2 = inlined_call_operand.vmem [shape: f32[1,32], index: 2, kind: input, shape index: {}]   ;;  %s1857_s3 = inlined_call_operand.vmem [shape: f32[2,32,96], index: 3, kind: input, shape index: {}]   ;;  %s1858_s4 = inlined_call_operand.vmem [shape: f32[2,1,96], index: 4, kind: input, shape index: {}]   ;;  %s1859_s5 = inlined_call_operand.vmem [shape: f32[2,32,32], index: 5, kind: input, shape index: {}]   ;;  %s1860_s6 = inlined_call_operand.vmem [shape: f32[2,1,32], index: 6, kind: input, shape index: {}]   ;;  %s1861_s7 = inlined_call_operand.vmem [shape: f32[2,32,64], index: 7, kind: input, shape index: {}]   ;;  %s1862_s8 = inlined_call_operand.vmem [shape: f32[2,1,64], index: 8, kind: input, shape index: {}]   ;;  %s1863_s9 = inlined_call_operand.vmem [shape: f32[2,64,32], index: 9, kind: input, shape index: {}]   ;;  %s1864_s10 = inlined_call_operand.vmem [shape: f32[2,1,32], index: 10, kind: input, shape index: {}]   ;;  %s1865_s11 = inlined_call_operand.vmem [shape: f32[2,1,32], index: 11, kind: input, shape index: {}]   ;;  %s1866_s12 = inlined_call_operand.vmem [shape: f32[2,1,32], index: 12, kind: input, shape index: {}]   ;;  %s1867_s13 = inlined_call_operand.vmem [shape: f32[2,1,32], index: 13, kind: input, shape index: {}]   ;;  %s1868_s14 = inlined_call_operand.vmem [shape: f32[2,1,32], index: 14, kind: input, shape index: {}]   ;;  %s1869_s15 = inlined_call_operand.hbm [shape: f32[16,32], index: 15, kind: output, shape index: {}]  }
   0x1   :  { %v53_v0 = vld [vmem:[%s1855_s1] sm:$0x3]  ;;  %v95_v2 = vld [vmem:[%s1857_s3 + $0x18] sm:$0xff]  ;;  %v94_v3 = vld [vmem:[%s1857_s3 + $0x10] sm:$0xff] }
   0x2   :  { %v51_v1 = vld [vmem:[%s1854_s0] sm:$0xff]  ;;  %1228 = vmatpush.msk.msra.mxu0 %vm65_vm0, %v53_v0  ;;  %1299 = vmatpush.msra.mxu1 %v95_v2  ;;  %v93_v4 = vld [vmem:[%s1857_s3 + $0x8] sm:$0xff] }
   0x3   :  { %1229 = vmatmul.msk.f32.vlgmr.msra.gmra.mxu0 %vm58_vm1, %v51_v1  ;;  %v92_v5 = vld [vmem:[%s1857_s3] sm:$0xff]  ;;  %v52_v6 = vld [vmem:[%s1854_s0 + $0x8] sm:$0xff] }
   0x4   :  { %142 = vmatpush.msrb.mxu0 %v95_v2  ;;  %1300 = vmatpush.msra.mxu1 %v94_v3 }
   0x6   :  { %143 = vmatpush.msrb.mxu0 %v94_v3  ;;  %1301 = vmatpush.msra.mxu1 %v93_v4 }
   0x8   :  { %144 = vmatpush.msrb.mxu0 %v93_v4  ;;  %1302 = vmatpush.msra.mxu1 %v92_v5 }
   0x9   :  { %20 = vsyncpa [#allocation4], 0  ;;  %v1313_v7 = vld [vmem:[%s1856_s2] ss:$0 sm:$0xff]  ;;  %vm123_vm2 = vcmask 261120   ;;  %s1406_s2 = smov 80  }
   0xa   :  { %145 = vmatpush.msrb.mxu0 %v92_v5  ;;  %v1314_v12 = vld [vmem:[%s1858_s4] ss:$0 sm:$0xff]  ;;  %s1407_s19 = smov 96   ;;  %s1408_s20 = smov 112   ;;  %vm158_vm3 = vcmask 130048   ;;  %vm184_vm4 = vcmask 64512  }
   0xb   :  { %1230 = vmatmul.msk.f32.gmra.mxu0 %vm58_vm1, %v52_v6  ;;  %s1409_s21 = smov 48   ;;  %s1410_s22 = smov 64   ;;  %v100_v53 = vld [vmem:[%s1859_s5 + $0x18] sm:$0xff]  ;;  %v99_v54 = vld [vmem:[%s1859_s5 + $0x10] sm:$0xff]  ;;  %v98_v55 = vld [vmem:[%s1859_s5 + $0x8] sm:$0xff]  ;;  %vm292_vm5 = vcmask 261248  }
   0xc   :  { %s1411_s23 = smov 16   ;;  %v97_v56 = vld [vmem:[%s1859_s5] sm:$0xff]  ;;  %vm564_vm10 = vcmask 523264   ;;  %s1216_s28 = sshll.u32 %s1869_s15, 4  ;;  %s1217_s28 = int_to_ptr.hbm [resolvable:$true] %s1216_s28 }
   0xd   :  { %v1587_v6 = vld [vmem:[%s1860_s6] ss:$0 sm:$0xff]  ;;  %s1414_s29 = smov 128  }
  0x80   :  { %v86_v8 = vpop.f32.mrf.mxu0 }
  0x81   :  { %v1522_v9 = vadd.f32 %v1313_v7, %v86_v8 }
  0x83   :  { %1231 = vmatmul.msk.f32.vlgmr.msrb.gmra.mxu0 %vm123_vm2, %v1522_v9 }
  0x88   :  { %v89_v10 = vpop.f32.mrf.mxu0 }
  0x89   :  { %v1526_v11 = vadd.f32 %v1313_v7, %v89_v10 }
  0x8b   :  { %1232 = vmatmul.msk.f32.vlgmr.msra.gmra.mxu1 %vm123_vm2, %v1526_v11 }
 0x100   :  { %v147_v13 = vpop.f32.mrf.mxu0 }
 0x101   :  { %v148_v14 = vadd.f32 %v1314_v12, %v147_v13 }
 0x103   :  { %225 = vrot.lane.b32.xlu2 %v148_v14, %s1406_s2  ;;  %156 = vrot.lane.b32.xlu0 %v148_v14, %s1407_s19  ;;  %v153_v15 = vmul.f32 0.25, %v148_v14 }
 0x108   :  { %v150_v19 = vpop.f32.mrf.mxu1 }
 0x109   :  { %v1540_v20 = vadd.f32 %v1314_v12, %v150_v19 }
 0x10b   :  { %223 = vrot.lane.b32.xlu2 %v153_v15, %s1408_s20  ;;  %v154_v21 = vmul.f32 0.25, %v1540_v20 }
 0x15d   :  { %v226_v30 = vpop.permute.xlu2 %225 }
 0x165   :  { %v224_v33 = vpop.permute.xlu2 %223 }
 0x175   :  { %v157_v16 = vpop.permute.xlu0 %156 }
 0x176   :  { %1233 = vmatpush.xpose.msk.msra.mxu2 %vm158_vm3, %v157_v16 }
 0x179   :  { %1234 = vmatmul.msk.f32.vlgmr.msra.gmra.mxu2 %vm158_vm3, %v153_v15 }
 0x1fc   :  { %v181_v17 = vpop.f32.mrf.mxu2 }
 0x1fd   :  { %v185_v18 = vsel %vm184_vm4, %v181_v17, -inf }
 0x1fe   :  { %186 = vmax.xlane.f32.xlu0 %v185_v18 }
 0x212   :  { %262 = vrot.lane.b32.xlu0 %v148_v14, %s1409_s21 }
 0x21a   :  { %360 = vrot.lane.b32.xlu0 %v154_v21, %s1408_s20 }
 0x271   :  { %v187_v22 = vpop.xlane.xlu0 %186 }
 0x272   :  { %v188_v23 = vsub.f32 %v181_v17, %v187_v22 }
 0x274   :  { %v189_v24 = vmul.f32 1.442695, %v188_v23 }
 0x276   :  { %1330 = vpow2.f32 %v189_v24 }
 0x27c   :  { %v1331_v25 = vpop.eup %1330 }
 0x27d   :  { %v191_v26 = vsel %vm184_vm4, %v1331_v25, 0.0 }
 0x27e   :  { %192 = vadd.xlane.f32.xlu1 %v191_v26 }
 0x284   :  { %v263_v27 = vpop.permute.xlu0 %262 }
 0x285   :  { %283 = vmatpush.msrb.mxu2 %v263_v27 }
 0x28c   :  { %v361_v46 = vpop.permute.xlu0 %360 }
 0x297   :  { %196 = vrot.lane.b32.xlu1 %v148_v14, %s1410_s22 }
 0x2f1   :  { %v193_v28 = vpop.xlane.xlu1 %192 }
 0x2f2   :  { %1332 = vrcp.f32 %v193_v28 }
 0x2f8   :  { %v1333_v29 = vpop.eup %1332 }
 0x2f9   :  { %v195_v32 = vmul.f32 %v1333_v29, %v1331_v25 }
 0x309   :  { %v197_v31 = vpop.permute.xlu1 %196 }
 0x30a   :  { %217 = vmatpush.msra.mxu3 %v197_v31 }
 0x30b   :  { %1235 = vmatmul.msk.f32.vlgmr.msra.gmra.mxu3 %vm184_vm4, %v195_v32 }
 0x30c   :  { %1236 = vmatpush.xpose.msk.msrb.mxu3 %vm158_vm3, %v226_v30 }
 0x313   :  { %1237 = vmatmul.msk.f32.vlgmr.msrb.gmra.mxu3 %vm158_vm3, %v224_v33  ;;  %v105_v33 = vld [vmem:[%s1861_s7 + $0x18] sm:$0xff] }
 0x38e   :  { %v219_v34 = vpop.f32.mrf.mxu3 }
 0x38f   :  { %222 = vst.msk [vmem:[#allocation2] sm:$0xff] %vm158_vm3, %v219_v34  ;;  %v104_v34 = vld [vmem:[%s1861_s7 + $0x10] sm:$0xff] }
 0x396   :  { %v248_v35 = vpop.f32.mrf.mxu3 }
 0x397   :  { %v251_v36 = vsel %vm184_vm4, %v248_v35, -inf }
 0x398   :  { %252 = vmax.xlane.f32.xlu2 %v251_v36  ;;  %v102_v36 = vld [vmem:[%s1861_s7] sm:$0xff] }
 0x3b0   :  { %362 = vrot.lane.b32.xlu2 %v1540_v20, %s1406_s2 }
 0x40b   :  { %v253_v37 = vpop.xlane.xlu2 %252 }
 0x40c   :  { %v254_v38 = vsub.f32 %v248_v35, %v253_v37  ;;  %v103_v35 = vld [vmem:[%s1861_s7 + $0x8] sm:$0xff] }
 0x40e   :  { %v255_v39 = vmul.f32 1.442695, %v254_v38 }
 0x410   :  { %1334 = vpow2.f32 %v255_v39 }
 0x413   :  { %v363_v40 = vpop.permute.xlu2 %362 }
 0x414   :  { %1242 = vmatpush.xpose.msk.msra.mxu2 %vm158_vm3, %v363_v40 }
 0x416   :  { %v1335_v41 = vpop.eup %1334 }
 0x417   :  { %v257_v42 = vsel %vm184_vm4, %v1335_v41, 0.0 }
 0x418   :  { %258 = vadd.xlane.f32.xlu1 %v257_v42  ;;  %v113_v42 = vld [vmem:[%s1863_s9 + $0x30] sm:$0xff] }
 0x431   :  { %295 = vrot.lane.b32.xlu1 %v1540_v20, %s1407_s19 }
 0x48b   :  { %v259_v43 = vpop.xlane.xlu1 %258 }
 0x48c   :  { %1336 = vrcp.f32 %v259_v43 }
 0x492   :  { %v1337_v44 = vpop.eup %1336 }
 0x493   :  { %v261_v45 = vmul.f32 %v1337_v44, %v1335_v41  ;;  %v114_v41 = vld [vmem:[%s1863_s9 + $0x38] sm:$0xff]  ;;  %v112_v44 = vld [vmem:[%s1863_s9 + $0x28] sm:$0xff] }
 0x495   :  { %1238 = vmatmul.msk.f32.vlgmr.msrb.gmra.mxu2 %vm184_vm4, %v261_v45 }
 0x496   :  { %579 = vmatpush.msrb.mxu2 %v114_v41 }
 0x498   :  { %580 = vmatpush.msrb.mxu2 %v113_v42 }
 0x49a   :  { %581 = vmatpush.msrb.mxu2 %v112_v44 }
 0x49d   :  { %1243 = vmatmul.msk.f32.vlgmr.msra.gmra.mxu2 %vm158_vm3, %v361_v46  ;;  %v111_v46 = vld [vmem:[%s1863_s9 + $0x20] sm:$0xff] }
 0x49e   :  { %582 = vmatpush.msrb.mxu2 %v111_v46 }
 0x4a3   :  { %v296_v47 = vpop.permute.xlu1 %295 }
 0x4a4   :  { %1239 = vmatpush.xpose.msk.msra.mxu0 %vm158_vm3, %v296_v47 }
 0x4a7   :  { %1240 = vmatmul.msk.f32.vlgmr.msra.gmra.mxu0 %vm158_vm3, %v154_v21 }
 0x4a8   :  { %453 = vmatpush.msrb.mxu0 %v100_v53 }
 0x4aa   :  { %454 = vmatpush.msrb.mxu0 %v99_v54  ;;  %v1317_v54 = vld [vmem:[%s1866_s12] ss:$0 sm:$0xff] }
 0x4ac   :  { %455 = vmatpush.msrb.mxu0 %v98_v55 }
 0x4ae   :  { %456 = vmatpush.msrb.mxu0 %v97_v56 }
 0x518   :  { %v285_v48 = vpop.f32.mrf.mxu2 }
 0x519   :  { %289 = vrot.lane.b32.xlu2 %v285_v48, %s1411_s23  ;;  %v110_v48 = vld [vmem:[%s1863_s9 + $0x18] sm:$0xff] }
 0x51a   :  { %583 = vmatpush.msrb.mxu2 %v110_v48  ;;  %v1320_v48 = vld [vmem:[%s1867_s13] ss:$0 sm:$0xff] }
 0x520   :  { %v385_v49 = vpop.f32.mrf.mxu2 }
 0x521   :  { %v388_v50 = vsel %vm184_vm4, %v385_v49, -inf }
 0x522   :  { %389 = vmax.xlane.f32.xlu0 %v388_v50 }
 0x524   :  { %v319_v51 = vpop.f32.mrf.mxu0 }
 0x525   :  { %v322_v52 = vsel %vm184_vm4, %v319_v51, -inf }
 0x536   :  { %399 = vrot.lane.b32.xlu0 %v1540_v20, %s1409_s21 }
 0x542   :  { %323 = vmax.xlane.f32.xlu2 %v322_v52 }
 0x573   :  { %v290_v57 = vpop.permute.xlu2 %289 }
 0x574   :  { %293 = vst.msk [vmem:[#allocation2] sm:$0xff] %vm292_vm5, %v290_v57 }
 0x57b   :  { %v430_v58 = vld [vmem:[#allocation2] sm:$0xff] }
 0x57c   :  { %1245 = vmatmul.msk.f32.vlgmr.msrb.gmra.mxu0 %vm123_vm2, %v430_v58 }
 0x595   :  { %v390_v59 = vpop.xlane.xlu0 %389 }
 0x596   :  { %v391_v60 = vsub.f32 %v385_v49, %v390_v59  ;;  %v109_v59 = vld [vmem:[%s1863_s9 + $0x10] sm:$0xff] }
 0x597   :  { %584 = vmatpush.msrb.mxu2 %v109_v59 }
 0x598   :  { %v392_v61 = vmul.f32 1.442695, %v391_v60  ;;  %v108_v60 = vld [vmem:[%s1863_s9 + $0x8] sm:$0xff] }
 0x599   :  { %585 = vmatpush.msrb.mxu2 %v108_v60 }
 0x59a   :  { %1338 = vpow2.f32 %v392_v61  ;;  %v107_v61 = vld [vmem:[%s1863_s9] sm:$0xff] }
 0x59b   :  { %586 = vmatpush.msrb.mxu2 %v107_v61 }
 0x5a0   :  { %v1339_v62 = vpop.eup %1338 }
 0x5a1   :  { %v394_v63 = vsel %vm184_vm4, %v1339_v62, 0.0 }
 0x5a2   :  { %395 = vadd.xlane.f32.xlu1 %v394_v63 }
 0x5a8   :  { %v400_v0 = vpop.permute.xlu0 %399 }
 0x5a9   :  { %420 = vmatpush.msrb.mxu1 %v400_v0 }
 0x5b5   :  { %v324_v1 = vpop.xlane.xlu2 %323 }
 0x5b6   :  { %v325_v2 = vsub.f32 %v319_v51, %v324_v1  ;;  %v1316_v51 = vld [vmem:[%s1865_s11] ss:$0 sm:$0xff] }
 0x5b8   :  { %v326_v3 = vmul.f32 1.442695, %v325_v2 }
 0x5ba   :  { %1340 = vpow2.f32 %v326_v3 }
 0x5c0   :  { %v1341_v4 = vpop.eup %1340 }
 0x5c1   :  { %v328_v5 = vsel %vm184_vm4, %v1341_v4, 0.0 }
 0x5c2   :  { %329 = vadd.xlane.f32.xlu2 %v328_v5 }
 0x5da   :  { %333 = vrot.lane.b32.xlu2 %v1540_v20, %s1410_s22  ;;  %v1412_v20 = vmov 32.0  }
 0x5f9   :  { %v458_v7 = vpop.f32.mrf.mxu0 }
 0x5fa   :  { %v459_v8 = vadd.f32 %v1587_v6, %v458_v7 }
 0x5fc   :  { %v464_v10 = vadd.f32 %v459_v8, %v1522_v9 }
 0x5fe   :  { %v466_v12 = vsel %vm123_vm2, %v464_v10, 0.0 }
 0x5ff   :  { %467 = vadd.xlane.f32.xlu0 %v466_v12  ;;  %v1660_v12 = vld [vmem:[%s1864_s10] ss:$0 sm:$0xff] }
 0x615   :  { %v396_v13 = vpop.xlane.xlu1 %395 }
 0x616   :  { %1342 = vrcp.f32 %v396_v13 }
 0x61c   :  { %v1343_v14 = vpop.eup %1342 }
 0x61d   :  { %v398_v15 = vmul.f32 %v1343_v14, %v1339_v62  ;;  %v1649_v62 = vld [vmem:[%s1862_s8] ss:$0 sm:$0xff] }
 0x61f   :  { %1244 = vmatmul.msk.f32.vlgmr.msrb.gmra.mxu1 %vm184_vm4, %v398_v15 }
 0x635   :  { %v330_v16 = vpop.xlane.xlu2 %329 }
 0x636   :  { %1344 = vrcp.f32 %v330_v16 }
 0x637   :  { %1346 = vrcp.f32 %v1412_v20 }
 0x63c   :  { %v1345_v17 = vpop.eup %1344 }
 0x63d   :  { %v332_v18 = vmul.f32 %v1345_v17, %v1341_v4  ;;  %v334_v19 = vpop.permute.xlu2 %333  ;;  %v1347_v9 = vpop.eup %1346 }
 0x63e   :  { %354 = vmatpush.msra.mxu3 %v334_v19  ;;  %v473_v21 = vmul.f32 32.0, %v1347_v9  ;;  %vm477_vm6 = vweird.f32 %v1347_v9 }
 0x63f   :  { %1241 = vmatmul.msk.f32.vlgmr.msra.gmra.mxu3 %vm184_vm4, %v332_v18 }
 0x640   :  { %v474_v22 = vsub.f32 1.0, %v473_v21  ;;  %548 = vmatpush.msrb.mxu3 %v105_v33 }
 0x642   :  { %v475_v23 = vmul.f32 %v1347_v9, %v474_v22  ;;  %549 = vmatpush.msrb.mxu3 %v104_v34 }
 0x644   :  { %v476_v24 = vadd.f32 %v1347_v9, %v475_v23  ;;  %550 = vmatpush.msrb.mxu3 %v103_v35  ;;  %v1254_v35 = vld [vmem:[%s1857_s3 + $0x38] sm:$0xff] }
 0x645   :  { %711 = vmatpush.msra.mxu1 %v1254_v35 }
 0x646   :  { %v1594_v25 = vsel %vm477_vm6, %v1347_v9, %v476_v24  ;;  %551 = vmatpush.msrb.mxu3 %v102_v36  ;;  %v1253_v36 = vld [vmem:[%s1857_s3 + $0x30] sm:$0xff] }
 0x647   :  { %712 = vmatpush.msra.mxu1 %v1253_v36 }
 0x672   :  { %v468_v26 = vpop.xlane.xlu0 %467 }
 0x673   :  { %v479_v27 = vmul.f32 %v1594_v25, %v468_v26 }
 0x675   :  { %v481_v28 = vsub.f32 %v464_v10, %v479_v27 }
 0x677   :  { %v483_v29 = vmul.f32 %v481_v28, %v481_v28 }
 0x679   :  { %v485_v30 = vsel %vm123_vm2, %v483_v29, 0.0 }
 0x67a   :  { %486 = vadd.xlane.f32.xlu2 %v485_v30 }
 0x69c   :  { %v422_v31 = vpop.f32.mrf.mxu1 }
 0x69d   :  { %426 = vrot.lane.b32.xlu1 %v422_v31, %s1411_s23 }
 0x6c2   :  { %v356_v32 = vpop.f32.mrf.mxu3 }
 0x6c3   :  { %359 = vst.msk [vmem:[#allocation2 + $0x8] sm:$0xff] %vm158_vm3, %v356_v32 }
 0x6ed   :  { %v487_v37 = vpop.xlane.xlu2 %486 }
 0x6ee   :  { %v491_v38 = vmul.f32 %v487_v37, %v1594_v25  ;;  %v1252_v37 = vld [vmem:[%s1857_s3 + $0x28] sm:$0xff] }
 0x6ef   :  { %713 = vmatpush.msra.mxu1 %v1252_v37 }
 0x6f0   :  { %v493_v39 = vadd.f32 1e-05, %v491_v38  ;;  %v1251_v38 = vld [vmem:[%s1857_s3 + $0x20] sm:$0xff] }
 0x6f1   :  { %714 = vmatpush.msra.mxu1 %v1251_v38 }
 0x6f2   :  { %1348 = vrsqrt.f32 %v493_v39  ;;  %vm501_vm8 = vweird.f32 %v493_v39 }
 0x6f8   :  { %v1349_v40 = vpop.eup %1348 }
 0x6f9   :  { %v496_v43 = vmul.f32 %v1349_v40, %v493_v39  ;;  %vm502_vm7 = vweird.f32 %v1349_v40 }
 0x6fa   :  { %vm503_vm9 = vmor %vm501_vm8, %vm502_vm7 }
 0x6fb   :  { %v497_v45 = vmul.f32 %v1349_v40, %v496_v43 }
 0x6fd   :  { %v498_v47 = vmul.f32 0.5, %v497_v45 }
 0x6ff   :  { %v499_v49 = vsub.f32 1.5, %v498_v47 }
 0x701   :  { %v500_v50 = vmul.f32 %v1349_v40, %v499_v49 }
 0x703   :  { %v504_v52 = vsel %vm503_vm9, %v1349_v40, %v500_v50 }
 0x704   :  { %v515_v53 = vmul.f32 %v504_v52, %v481_v28 }
 0x706   :  { %v520_v55 = vmul.f32 %v1316_v51, %v515_v53 }
 0x708   :  { %v525_v56 = vadd.f32 %v1317_v54, %v520_v55 }
 0x70a   :  { %1247 = vmatmul.msk.f32.vlgmr.msrb.gmra.mxu3 %vm123_vm2, %v525_v56 }
 0x70f   :  { %v427_v57 = vpop.permute.xlu1 %426 }
 0x710   :  { %429 = vst.msk [vmem:[#allocation2 + $0x8] sm:$0xff] %vm292_vm5, %v427_v57  ;;  %v1322_v57 = vld [vmem:[%s1858_s4 + $0x1] ss:$0 sm:$0xff] }
 0x717   :  { %v431_v58 = vld [vmem:[#allocation2 + $0x8] sm:$0xff] }
 0x718   :  { %1246 = vmatmul.msk.f32.gmra.mxu0 %vm123_vm2, %v431_v58 }
 0x78d   :  { %v553_v63 = vpop.f32.mrf.mxu3 }
 0x78e   :  { %v554_v0 = vadd.f32 %v1649_v62, %v553_v63 }
 0x790   :  { %v559_v1 = vmax.f32 %v554_v0, 0.0 }
 0x792   :  { %1249 = vmatmul.msk.f32.vlgmr.msrb.gmra.mxu2 %vm564_vm10, %v559_v1 }
 0x795   :  { %v461_v2 = vpop.f32.mrf.mxu0 }
 0x796   :  { %v462_v3 = vadd.f32 %v1587_v6, %v461_v2 }
 0x798   :  { %v465_v4 = vadd.f32 %v462_v3, %v1526_v11 }
 0x79a   :  { %v469_v5 = vsel %vm123_vm2, %v465_v4, 0.0 }
 0x79b   :  { %470 = vadd.xlane.f32.xlu1 %v469_v5 }
 0x80e   :  { %v471_v7 = vpop.xlane.xlu1 %470 }
 0x80f   :  { %v480_v8 = vmul.f32 %v1594_v25, %v471_v7 }
 0x811   :  { %v482_v10 = vsub.f32 %v465_v4, %v480_v8 }
 0x813   :  { %v484_v13 = vmul.f32 %v482_v10, %v482_v10 }
 0x815   :  { %v588_v14 = vpop.f32.mrf.mxu2  ;;  %v488_v15 = vsel %vm123_vm2, %v484_v13, 0.0 }
 0x816   :  { %v589_v6 = vadd.f32 %v1660_v12, %v588_v14  ;;  %489 = vadd.xlane.f32.xlu0 %v488_v15 }
 0x818   :  { %v594_v11 = vadd.f32 %v589_v6, %v525_v56 }
 0x81a   :  { %v596_v16 = vsel %vm123_vm2, %v594_v11, 0.0 }
 0x81e   :  { %597 = vadd.xlane.f32.xlu0 %v596_v16 }
 0x889   :  { %v490_v17 = vpop.xlane.xlu0 %489 }
 0x88a   :  { %v492_v18 = vmul.f32 %v490_v17, %v1594_v25 }
 0x88c   :  { %v494_v19 = vadd.f32 1e-05, %v492_v18 }
 0x88e   :  { %1350 = vrsqrt.f32 %v494_v19  ;;  %vm511_vm12 = vweird.f32 %v494_v19 }
 0x891   :  { %v598_v20 = vpop.xlane.xlu0 %597 }
 0x892   :  { %v602_v9 = vmul.f32 %v598_v20, %v1594_v25 }
 0x894   :  { %v1351_v21 = vpop.eup %1350  ;;  %v604_v22 = vsub.f32 %v594_v11, %v602_v9 }
 0x895   :  { %v506_v23 = vmul.f32 %v1351_v21, %v494_v19  ;;  %vm512_vm11 = vweird.f32 %v1351_v21 }
 0x896   :  { %v606_v24 = vmul.f32 %v604_v22, %v604_v22  ;;  %vm513_vm13 = vmor %vm511_vm12, %vm512_vm11 }
 0x897   :  { %v507_v26 = vmul.f32 %v1351_v21, %v506_v23 }
 0x898   :  { %v608_v27 = vsel %vm123_vm2, %v606_v24, 0.0 }
 0x899   :  { %v508_v28 = vmul.f32 0.5, %v507_v26  ;;  %609 = vadd.xlane.f32.xlu0 %v608_v27 }
 0x89b   :  { %v509_v29 = vsub.f32 1.5, %v508_v28 }
 0x89d   :  { %v510_v30 = vmul.f32 %v1351_v21, %v509_v29 }
 0x89f   :  { %v514_v31 = vsel %vm513_vm13, %v1351_v21, %v510_v30 }
 0x8a0   :  { %v516_v32 = vmul.f32 %v514_v31, %v482_v10 }
 0x8a2   :  { %v521_v33 = vmul.f32 %v1316_v51, %v516_v32  ;;  %v1321_v51 = vld [vmem:[%s1868_s14] ss:$0 sm:$0xff] }
 0x8a4   :  { %v526_v34 = vadd.f32 %v1317_v54, %v521_v33 }
 0x8a6   :  { %1248 = vmatmul.msk.f32.gmra.mxu3 %vm123_vm2, %v526_v34 }
 0x90c   :  { %v610_v39 = vpop.xlane.xlu0 %609 }
 0x90d   :  { %v614_v40 = vmul.f32 %v610_v39, %v1594_v25 }
 0x90f   :  { %v616_v41 = vadd.f32 1e-05, %v614_v40 }
 0x911   :  { %1352 = vrsqrt.f32 %v616_v41  ;;  %vm624_vm15 = vweird.f32 %v616_v41 }
 0x917   :  { %v1353_v42 = vpop.eup %1352 }
 0x918   :  { %v619_v43 = vmul.f32 %v1353_v42, %v616_v41  ;;  %vm625_vm14 = vweird.f32 %v1353_v42 }
 0x919   :  { %vm626_vm0 = vmor %vm624_vm15, %vm625_vm14 }
 0x91a   :  { %v620_v44 = vmul.f32 %v1353_v42, %v619_v43 }
 0x91c   :  { %v621_v45 = vmul.f32 0.5, %v620_v44 }
 0x91e   :  { %v622_v46 = vsub.f32 1.5, %v621_v45 }
 0x920   :  { %v623_v47 = vmul.f32 %v1353_v42, %v622_v46 }
 0x922   :  { %v627_v49 = vsel %vm626_vm0, %v1353_v42, %v623_v47 }
 0x923   :  { %v638_v50 = vmul.f32 %v627_v49, %v604_v22 }
 0x925   :  { %v643_v52 = vmul.f32 %v1320_v48, %v638_v50 }
 0x927   :  { %v1688_v53 = vadd.f32 %v1321_v51, %v643_v52 }
 0x929   :  { %v556_v54 = vpop.f32.mrf.mxu3  ;;  %1279 = vmatmul.msk.f32.vlgmr.msra.gmra.mxu1 %vm123_vm2, %v1688_v53 }
 0x92a   :  { %v557_v55 = vadd.f32 %v1649_v62, %v556_v54 }
 0x92c   :  { %v560_v56 = vmax.f32 %v557_v55, 0.0 }
 0x92e   :  { %1250 = vmatmul.msk.f32.gmra.mxu2 %vm564_vm10, %v560_v56 }
 0x9a6   :  { %v716_v58 = vpop.f32.mrf.mxu1 }
 0x9a7   :  { %v1697_v59 = vadd.f32 %v1322_v57, %v716_v58 }
 0x9a9   :  { %725 = vrot.lane.b32.xlu0 %v1697_v59, %s1407_s19  ;;  %v722_v1 = vmul.f32 0.25, %v1697_v59 }
 0x9b1   :  { %v591_v60 = vpop.f32.mrf.mxu2 }
 0x9b2   :  { %v592_v61 = vadd.f32 %v1660_v12, %v591_v60 }
 0x9b4   :  { %v595_v63 = vadd.f32 %v592_v61, %v526_v34 }
 0x9b6   :  { %v599_v0 = vsel %vm123_vm2, %v595_v63, 0.0 }
 0x9b7   :  { %600 = vadd.xlane.f32.xlu2 %v599_v0 }
 0xa1b   :  { %v726_v62 = vpop.permute.xlu0 %725 }
 0xa1c   :  { %1281 = vmatpush.xpose.msk.msra.mxu0 %vm158_vm3, %v726_v62 }
 0xa1f   :  { %1282 = vmatmul.msk.f32.vlgmr.msra.gmra.mxu0 %vm158_vm3, %v722_v1 }
 0xa2a   :  { %v601_v2 = vpop.xlane.xlu2 %600 }
 0xa2b   :  { %v603_v3 = vmul.f32 %v601_v2, %v1594_v25 }
 0xa2d   :  { %v605_v4 = vsub.f32 %v595_v63, %v603_v3 }
 0xa2f   :  { %v607_v5 = vmul.f32 %v605_v4, %v605_v4 }
 0xa31   :  { %v611_v7 = vsel %vm123_vm2, %v607_v5, 0.0 }
 0xa32   :  { %612 = vadd.xlane.f32.xlu1 %v611_v7 }
 0xa4b   :  { %792 = vrot.lane.b32.xlu1 %v1697_v59, %s1406_s2 }
 0xa53   :  { %763 = vrot.lane.b32.xlu1 %v1697_v59, %s1410_s22 }
 0xa9c   :  { %v749_v8 = vpop.f32.mrf.mxu0 }
 0xa9d   :  { %v752_v10 = vsel %vm184_vm4, %v749_v8, -inf }
 0xa9e   :  { %753 = vmax.xlane.f32.xlu2 %v752_v10  ;;  %v1259_v10 = vld [vmem:[%s1859_s5 + $0x38] sm:$0xff] }
 0xaa5   :  { %v613_v12 = vpop.xlane.xlu1 %612 }
 0xaa6   :  { %v615_v13 = vmul.f32 %v613_v12, %v1594_v25  ;;  %v1258_v12 = vld [vmem:[%s1859_s5 + $0x30] sm:$0xff] }
 0xaa8   :  { %v617_v14 = vadd.f32 1e-05, %v615_v13  ;;  %v1257_v13 = vld [vmem:[%s1859_s5 + $0x28] sm:$0xff] }
 0xaaa   :  { %1354 = vrsqrt.f32 %v617_v14  ;;  %vm634_vm6 = vweird.f32 %v617_v14 }
 0xab0   :  { %v1355_v15 = vpop.eup %1354 }
 0xab1   :  { %v629_v6 = vmul.f32 %v1355_v15, %v617_v14  ;;  %vm635_vm1 = vweird.f32 %v1355_v15  ;;  %v1256_v14 = vld [vmem:[%s1859_s5 + $0x20] sm:$0xff] }
 0xab2   :  { %vm636_vm7 = vmor %vm634_vm6, %vm635_vm1 }
 0xab3   :  { %v630_v11 = vmul.f32 %v1355_v15, %v629_v6 }
 0xab5   :  { %v631_v16 = vmul.f32 0.5, %v630_v11 }
 0xab6   :  { %790 = vrot.lane.b32.xlu2 %v722_v1, %s1408_s20 }
 0xab7   :  { %v632_v17 = vsub.f32 1.5, %v631_v16 }
 0xab9   :  { %v633_v18 = vmul.f32 %v1355_v15, %v632_v17 }
 0xabb   :  { %v637_v19 = vsel %vm636_vm7, %v1355_v15, %v633_v18 }
 0xabc   :  { %v639_v20 = vmul.f32 %v637_v19, %v605_v4 }
 0xabd   :  { %v793_v9 = vpop.permute.xlu1 %792 }
 0xabe   :  { %1284 = vmatpush.xpose.msk.msrb.mxu1 %vm158_vm3, %v793_v9  ;;  %v644_v21 = vmul.f32 %v1320_v48, %v639_v20  ;;  %v1323_v9 = vld [vmem:[%s1860_s6 + $0x1] ss:$0 sm:$0xff] }
 0xac0   :  { %v1716_v22 = vadd.f32 %v1321_v51, %v644_v21 }
 0xac2   :  { %1280 = vmatmul.msk.f32.gmra.mxu1 %vm123_vm2, %v1716_v22 }
 0xac5   :  { %v764_v23 = vpop.permute.xlu1 %763 }
 0xac6   :  { %784 = vmatpush.msra.mxu3 %v764_v23 }
 0xb11   :  { %v754_v24 = vpop.xlane.xlu2 %753 }
 0xb12   :  { %v755_v30 = vsub.f32 %v749_v8, %v754_v24 }
 0xb14   :  { %v756_v31 = vmul.f32 1.442695, %v755_v30 }
 0xb16   :  { %1356 = vpow2.f32 %v756_v31 }
 0xb19   :  { %v791_v26 = vpop.permute.xlu2 %790 }
 0xb1a   :  { %1285 = vmatmul.msk.f32.vlgmr.msrb.gmra.mxu1 %vm158_vm3, %v791_v26 }
 0xb1c   :  { %v1357_v32 = vpop.eup %1356 }
 0xb1d   :  { %v758_v33 = vsel %vm184_vm4, %v1357_v32, 0.0 }
 0xb3f   :  { %v719_v27 = vpop.f32.mrf.mxu1 }
 0xb40   :  { %v1721_v28 = vadd.f32 %v1322_v57, %v719_v27 }
 0xb42   :  { %928 = vrot.lane.b32.xlu0 %v1721_v28, %s1406_s2  ;;  %861 = vrot.lane.b32.xlu2 %v1721_v28, %s1407_s19  ;;  %v723_v29 = vmul.f32 0.25, %v1721_v28 }
 0xb4a   :  { %926 = vrot.lane.b32.xlu0 %v723_v29, %s1408_s20 }
 0xb74   :  { %759 = vadd.xlane.f32.xlu0 %v758_v33 }
 0xb97   :  { %v815_v34 = vpop.f32.mrf.mxu1 }
 0xb98   :  { %v818_v35 = vsel %vm184_vm4, %v815_v34, -inf }
 0xb99   :  { %819 = vmax.xlane.f32.xlu1 %v818_v35 }
 0xb9c   :  { %v862_v36 = vpop.permute.xlu2 %861 }
 0xb9d   :  { %1287 = vmatpush.xpose.msk.msrb.mxu3 %vm158_vm3, %v862_v36 }
 0xbb4   :  { %v929_v37 = vpop.permute.xlu0 %928 }
 0xbb5   :  { %1290 = vmatpush.xpose.msk.msra.mxu1 %vm158_vm3, %v929_v37  ;;  %v1264_v37 = vld [vmem:[%s1861_s7 + $0x38] sm:$0xff] }
 0xbbc   :  { %v927_v38 = vpop.permute.xlu0 %926 }
 0xbbd   :  { %1291 = vmatmul.msk.f32.vlgmr.msra.gmra.mxu1 %vm158_vm3, %v927_v38  ;;  %v1263_v38 = vld [vmem:[%s1861_s7 + $0x30] sm:$0xff] }
 0xbe7   :  { %v760_v39 = vpop.xlane.xlu0 %759 }
 0xbe8   :  { %1358 = vrcp.f32 %v760_v39  ;;  %v1262_v39 = vld [vmem:[%s1861_s7 + $0x28] sm:$0xff] }
 0xbee   :  { %v1359_v40 = vpop.eup %1358 }
 0xbef   :  { %v762_v41 = vmul.f32 %v1359_v40, %v1357_v32 }
 0xbf1   :  { %1283 = vmatmul.msk.f32.vlgmr.msra.gmra.mxu3 %vm184_vm4, %v762_v41 }
 0xbf2   :  { %1019 = vmatpush.msra.mxu3 %v1259_v10  ;;  %v1326_v10 = vld [vmem:[%s1862_s8 + $0x1] ss:$0 sm:$0xff] }
 0xbf4   :  { %1020 = vmatpush.msra.mxu3 %v1258_v12 }
 0xbf6   :  { %1021 = vmatpush.msra.mxu3 %v1257_v13 }
 0xbf8   :  { %1022 = vmatpush.msra.mxu3 %v1256_v14 }
 0xbf9   :  { %1288 = vmatmul.msk.f32.vlgmr.msrb.gmra.mxu3 %vm158_vm3, %v723_v29 }
 0xc0c   :  { %v820_v42 = vpop.xlane.xlu1 %819 }
 0xc0d   :  { %v821_v43 = vsub.f32 %v815_v34, %v820_v42 }
 0xc0f   :  { %v822_v44 = vmul.f32 1.442695, %v821_v43  ;;  %v1273_v43 = vld [vmem:[%s1863_s9 + $0x78] sm:$0xff] }
 0xc10   :  { %1137 = vmatpush.msrb.mxu1 %v1273_v43 }
 0xc11   :  { %1360 = vpow2.f32 %v822_v44  ;;  %v1272_v44 = vld [vmem:[%s1863_s9 + $0x70] sm:$0xff] }
 0xc12   :  { %1138 = vmatpush.msrb.mxu1 %v1272_v44 }
 0xc17   :  { %v1361_v45 = vpop.eup %1360 }
 0xc18   :  { %v824_v46 = vsel %vm184_vm4, %v1361_v45, 0.0 }
 0xc19   :  { %825 = vadd.xlane.f32.xlu0 %v824_v46 }
 0xc3a   :  { %v951_v47 = vpop.f32.mrf.mxu1 }
 0xc3b   :  { %v954_v48 = vsel %vm184_vm4, %v951_v47, -inf }
 0xc3c   :  { %955 = vmax.xlane.f32.xlu2 %v954_v48 }
 0xc54   :  { %829 = vrot.lane.b32.xlu2 %v1697_v59, %s1409_s21 }
 0xc74   :  { %v786_v49 = vpop.f32.mrf.mxu3 }
 0xc75   :  { %789 = vst.msk [vmem:[#allocation2] sm:$0xff] %vm158_vm3, %v786_v49 }
 0xc7c   :  { %v885_v50 = vpop.f32.mrf.mxu3 }
 0xc7d   :  { %v888_v51 = vsel %vm184_vm4, %v885_v50, -inf }
 0xc7e   :  { %889 = vmax.xlane.f32.xlu0 %v888_v51  ;;  %v1324_v51 = vld [vmem:[%s1865_s11 + $0x1] ss:$0 sm:$0xff] }
 0xc8c   :  { %v826_v52 = vpop.xlane.xlu0 %825 }
 0xc8d   :  { %1362 = vrcp.f32 %v826_v52 }
 0xc92   :  { %965 = vrot.lane.b32.xlu0 %v1721_v28, %s1409_s21 }
 0xc93   :  { %v1363_v57 = vpop.eup %1362 }
 0xc94   :  { %v828_v58 = vmul.f32 %v1363_v57, %v1361_v45 }
 0xcaf   :  { %v956_v54 = vpop.xlane.xlu2 %955 }
 0xcb0   :  { %v957_v55 = vsub.f32 %v951_v47, %v956_v54 }
 0xcb2   :  { %v958_v56 = vmul.f32 1.442695, %v957_v55  ;;  %v1325_v55 = vld [vmem:[%s1866_s12 + $0x1] ss:$0 sm:$0xff] }
 0xcb4   :  { %1364 = vpow2.f32 %v958_v56 }
 0xcb7   :  { %v830_v60 = vpop.permute.xlu2 %829 }
 0xcb8   :  { %850 = vmatpush.msrb.mxu0 %v830_v60 }
 0xcb9   :  { %1286 = vmatmul.msk.f32.vlgmr.msrb.gmra.mxu0 %vm184_vm4, %v828_v58 }
 0xcba   :  { %v1365_v59 = vpop.eup %1364 }
 0xcbb   :  { %v960_v61 = vsel %vm184_vm4, %v1365_v59, 0.0 }
 0xcbc   :  { %961 = vadd.xlane.f32.xlu1 %v960_v61 }
 0xcf1   :  { %v890_v63 = vpop.xlane.xlu0 %889 }
 0xcf2   :  { %v891_v0 = vsub.f32 %v885_v50, %v890_v63 }
 0xcf4   :  { %v892_v62 = vmul.f32 1.442695, %v891_v0  ;;  %v1271_v0 = vld [vmem:[%s1863_s9 + $0x68] sm:$0xff] }
 0xcf5   :  { %1139 = vmatpush.msrb.mxu1 %v1271_v0 }
 0xcf6   :  { %1366 = vpow2.f32 %v892_v62  ;;  %v1270_v62 = vld [vmem:[%s1863_s9 + $0x60] sm:$0xff] }
 0xcf7   :  { %1140 = vmatpush.msrb.mxu1 %v1270_v62 }
 0xcfc   :  { %v1367_v1 = vpop.eup %1366 }
 0xcfd   :  { %v894_v2 = vsel %vm184_vm4, %v1367_v1, 0.0 }
 0xcfe   :  { %895 = vadd.xlane.f32.xlu1 %v894_v2  ;;  %v1268_v2 = vld [vmem:[%s1863_s9 + $0x50] sm:$0xff] }
 0xd04   :  { %v966_v3 = vpop.permute.xlu0 %965 }
 0xd05   :  { %986 = vmatpush.msra.mxu0 %v966_v3  ;;  %v1267_v3 = vld [vmem:[%s1863_s9 + $0x48] sm:$0xff] }
 0xd17   :  { %899 = vrot.lane.b32.xlu1 %v1721_v28, %s1410_s22 }
 0xd2f   :  { %v962_v4 = vpop.xlane.xlu1 %961 }
 0xd30   :  { %1368 = vrcp.f32 %v962_v4  ;;  %v1266_v4 = vld [vmem:[%s1863_s9 + $0x40] sm:$0xff] }
 0xd36   :  { %v1369_v5 = vpop.eup %1368  ;;  %v852_v7 = vpop.f32.mrf.mxu0 }
 0xd37   :  { %v964_v8 = vmul.f32 %v1369_v5, %v1365_v59  ;;  %856 = vrot.lane.b32.xlu2 %v852_v7, %s1411_s23 }
 0xd39   :  { %1292 = vmatmul.msk.f32.vlgmr.msra.gmra.mxu0 %vm184_vm4, %v964_v8 }
 0xd71   :  { %v896_v15 = vpop.xlane.xlu1 %895 }
 0xd72   :  { %1370 = vrcp.f32 %v896_v15 }
 0xd78   :  { %v1371_v6 = vpop.eup %1370 }
 0xd79   :  { %v898_v11 = vmul.f32 %v1371_v6, %v1367_v1  ;;  %v1269_v1 = vld [vmem:[%s1863_s9 + $0x58] sm:$0xff] }
 0xd7a   :  { %1141 = vmatpush.msrb.mxu1 %v1269_v1 }
 0xd7c   :  { %1142 = vmatpush.msrb.mxu1 %v1268_v2 }
 0xd7e   :  { %1143 = vmatpush.msrb.mxu1 %v1267_v3 }
 0xd80   :  { %1144 = vmatpush.msrb.mxu1 %v1266_v4 }
 0xd89   :  { %v900_v16 = vpop.permute.xlu1 %899 }
 0xd8a   :  { %920 = vmatpush.msra.mxu2 %v900_v16 }
 0xd8b   :  { %1289 = vmatmul.msk.f32.vlgmr.msra.gmra.mxu2 %vm184_vm4, %v898_v11 }
 0xd8c   :  { %1107 = vmatpush.msrb.mxu2 %v1264_v37 }
 0xd8e   :  { %1108 = vmatpush.msrb.mxu2 %v1263_v38 }
 0xd90   :  { %1109 = vmatpush.msrb.mxu2 %v1262_v39 }
 0xd91   :  { %v857_v17 = vpop.permute.xlu2 %856 }
 0xd92   :  { %859 = vst.msk [vmem:[#allocation2] sm:$0xff] %vm292_vm5, %v857_v17 }
 0xd99   :  { %v996_v18 = vld [vmem:[#allocation2] sm:$0xff] }
 0xd9a   :  { %1293 = vmatmul.msk.f32.vlgmr.msra.gmra.mxu3 %vm123_vm2, %v996_v18 }
 0xdb6   :  { %v988_v19 = vpop.f32.mrf.mxu0 }
 0xdb7   :  { %992 = vrot.lane.b32.xlu0 %v988_v19, %s1411_s23 }
 0xe0e   :  { %v922_v20 = vpop.f32.mrf.mxu2 }
 0xe0f   :  { %925 = vst.msk [vmem:[#allocation2 + $0x8] sm:$0xff] %vm158_vm3, %v922_v20 }
 0xe1d   :  { %v1024_v21 = vpop.f32.mrf.mxu3 }
 0xe1e   :  { %v1025_v23 = vadd.f32 %v1323_v9, %v1024_v21 }
 0xe20   :  { %v1030_v24 = vadd.f32 %v1025_v23, %v1688_v53  ;;  %v1327_v23 = vld [vmem:[%s1864_s10 + $0x1] ss:$0 sm:$0xff] }
 0xe22   :  { %v1032_v26 = vsel %vm123_vm2, %v1030_v24, 0.0 }
 0xe23   :  { %1033 = vadd.xlane.f32.xlu2 %v1032_v26 }
 0xe29   :  { %v993_v27 = vpop.permute.xlu0 %992 }
 0xe2a   :  { %995 = vst.msk [vmem:[#allocation2 + $0x8] sm:$0xff] %vm292_vm5, %v993_v27 }
 0xe31   :  { %v997_v28 = vld [vmem:[#allocation2 + $0x8] sm:$0xff] }
 0xe32   :  { %1294 = vmatmul.msk.f32.gmra.mxu3 %vm123_vm2, %v997_v28 }
 0xe96   :  { %v1034_v29 = vpop.xlane.xlu2 %1033 }
 0xe97   :  { %v1038_v30 = vmul.f32 %v1034_v29, %v1594_v25 }
 0xe99   :  { %v1040_v31 = vsub.f32 %v1030_v24, %v1038_v30 }
 0xe9b   :  { %v1042_v32 = vmul.f32 %v1040_v31, %v1040_v31 }
 0xe9d   :  { %v1044_v33 = vsel %vm123_vm2, %v1042_v32, 0.0 }
 0xe9e   :  { %1045 = vadd.xlane.f32.xlu1 %v1044_v33 }
 0xeb5   :  { %v1027_v34 = vpop.f32.mrf.mxu3 }
 0xeb6   :  { %v1028_v35 = vadd.f32 %v1323_v9, %v1027_v34 }
 0xeb8   :  { %v1031_v53 = vadd.f32 %v1028_v35, %v1716_v22  ;;  %v1261_v22 = vld [vmem:[%s1861_s7 + $0x20] sm:$0xff]  ;;  %s1415_s7 = smov 8  }
 0xeb9   :  { %1110 = vmatpush.msrb.mxu2 %v1261_v22 }
 0xeba   :  { %v1035_v36 = vsel %vm123_vm2, %v1031_v53, 0.0 }
 0xebb   :  { %1036 = vadd.xlane.f32.xlu0 %v1035_v36 }
 0xf11   :  { %v1046_v40 = vpop.xlane.xlu1 %1045 }
 0xf12   :  { %v1050_v41 = vmul.f32 %v1046_v40, %v1594_v25 }
 0xf14   :  { %v1052_v42 = vadd.f32 1e-05, %v1050_v41 }
 0xf16   :  { %1372 = vrsqrt.f32 %v1052_v42  ;;  %vm1060_vm4 = vweird.f32 %v1052_v42 }
 0xf1c   :  { %v1373_v45 = vpop.eup %1372 }
 0xf1d   :  { %v1055_v46 = vmul.f32 %v1373_v45, %v1052_v42  ;;  %vm1061_vm3 = vweird.f32 %v1373_v45 }
 0xf1e   :  { %vm1062_vm5 = vmor %vm1060_vm4, %vm1061_vm3 }
 0xf1f   :  { %v1056_v47 = vmul.f32 %v1373_v45, %v1055_v46 }
 0xf21   :  { %v1057_v48 = vmul.f32 0.5, %v1056_v47 }
 0xf23   :  { %v1058_v49 = vsub.f32 1.5, %v1057_v48  ;;  %v1328_v48 = vld [vmem:[%s1867_s13 + $0x1] ss:$0 sm:$0xff]  ;;  %s1413_s13 = smov [#allocation3]  }
 0xf25   :  { %v1059_v50 = vmul.f32 %v1373_v45, %v1058_v49 }
 0xf27   :  { %v1063_v52 = vsel %vm1062_vm5, %v1373_v45, %v1059_v50 }
 0xf28   :  { %v1074_v54 = vmul.f32 %v1063_v52, %v1040_v31 }
 0xf2a   :  { %v1079_v56 = vmul.f32 %v1324_v51, %v1074_v54 }
 0xf2c   :  { %v1084_v57 = vadd.f32 %v1325_v55, %v1079_v56 }
 0xf2e   :  { %1295 = vmatmul.msk.f32.vlgmr.msrb.gmra.mxu2 %vm123_vm2, %v1084_v57  ;;  %v1037_v58 = vpop.xlane.xlu0 %1036 }
 0xf2f   :  { %v1039_v60 = vmul.f32 %v1037_v58, %v1594_v25 }
 0xf31   :  { %v1041_v59 = vsub.f32 %v1031_v53, %v1039_v60 }
 0xf33   :  { %v1043_v61 = vmul.f32 %v1041_v59, %v1041_v59 }
 0xf35   :  { %v1047_v63 = vsel %vm123_vm2, %v1043_v61, 0.0 }
 0xf36   :  { %1048 = vadd.xlane.f32.xlu2 %v1047_v63 }
 0xfa9   :  { %v1049_v5 = vpop.xlane.xlu2 %1048 }
 0xfaa   :  { %v1051_v7 = vmul.f32 %v1049_v5, %v1594_v25 }
 0xfac   :  { %v1053_v8 = vadd.f32 1e-05, %v1051_v7 }
 0xfae   :  { %1374 = vrsqrt.f32 %v1053_v8  ;;  %vm1070_vm9 = vweird.f32 %v1053_v8 }
 0xfb1   :  { %v1112_v12 = vpop.f32.mrf.mxu2 }
 0xfb2   :  { %v1113_v13 = vadd.f32 %v1326_v10, %v1112_v12 }
 0xfb4   :  { %v1375_v14 = vpop.eup %1374  ;;  %v1118_v15 = vmax.f32 %v1113_v13, 0.0 }
 0xfb5   :  { %v1065_v6 = vmul.f32 %v1375_v14, %v1053_v8  ;;  %vm1071_vm8 = vweird.f32 %v1375_v14 }
 0xfb6   :  { %1297 = vmatmul.msk.f32.vlgmr.msrb.gmra.mxu1 %vm564_vm10, %v1118_v15  ;;  %vm1072_vm11 = vmor %vm1070_vm9, %vm1071_vm8 }
 0xfb7   :  { %v1066_v11 = vmul.f32 %v1375_v14, %v1065_v6 }
 0xfb9   :  { %v1067_v16 = vmul.f32 0.5, %v1066_v11 }
 0xfbb   :  { %v1068_v17 = vsub.f32 1.5, %v1067_v16 }
 0xfbd   :  { %v1069_v18 = vmul.f32 %v1375_v14, %v1068_v17 }
 0xfbf   :  { %v1073_v19 = vsel %vm1072_vm11, %v1375_v14, %v1069_v18 }
 0xfc0   :  { %v1075_v20 = vmul.f32 %v1073_v19, %v1041_v59 }
 0xfc2   :  { %v1080_v9 = vmul.f32 %v1324_v51, %v1075_v20  ;;  %v1329_v51 = vld [vmem:[%s1868_s14 + $0x1] ss:$0 sm:$0xff]  ;;  %s1214_s14 = sshll.u32 %s1413_s13, 4  ;;  %s1215_s14 = int_to_ptr.vmem [resolvable:$true] %s1214_s14 }
 0xfc4   :  { %v1085_v21 = vadd.f32 %v1325_v55, %v1080_v9 }
 0xfc6   :  { %1296 = vmatmul.msk.f32.gmra.mxu2 %vm123_vm2, %v1085_v21 }
0x1033   :  { %v1146_v24 = vpop.f32.mrf.mxu1 }
0x1034   :  { %v1147_v26 = vadd.f32 %v1327_v23, %v1146_v24 }
0x1036   :  { %v1152_v27 = vadd.f32 %v1147_v26, %v1084_v57 }
0x1038   :  { %v1154_v28 = vsel %vm123_vm2, %v1152_v27, 0.0 }
0x1039   :  { %1155 = vadd.xlane.f32.xlu0 %v1154_v28 }
0x1049   :  { %v1115_v29 = vpop.f32.mrf.mxu2 }
0x104a   :  { %v1116_v30 = vadd.f32 %v1326_v10, %v1115_v29 }
0x104c   :  { %v1119_v31 = vmax.f32 %v1116_v30, 0.0 }
0x104e   :  { %1298 = vmatmul.msk.f32.gmra.mxu1 %vm564_vm10, %v1119_v31 }
0x10ac   :  { %v1156_v32 = vpop.xlane.xlu0 %1155 }
0x10ad   :  { %v1160_v33 = vmul.f32 %v1156_v32, %v1594_v25 }
0x10af   :  { %v1162_v34 = vsub.f32 %v1152_v27, %v1160_v33 }
0x10b1   :  { %v1164_v35 = vmul.f32 %v1162_v34, %v1162_v34 }
0x10b3   :  { %v1166_v53 = vsel %vm123_vm2, %v1164_v35, 0.0 }
0x10b4   :  { %1167 = vadd.xlane.f32.xlu1 %v1166_v53 }
0x10cb   :  { %v1149_v36 = vpop.f32.mrf.mxu1 }
0x10cc   :  { %v1150_v37 = vadd.f32 %v1327_v23, %v1149_v36 }
0x10ce   :  { %v1153_v38 = vadd.f32 %v1150_v37, %v1085_v21 }
0x10d0   :  { %v1157_v39 = vsel %vm123_vm2, %v1153_v38, 0.0 }
0x10d1   :  { %1158 = vadd.xlane.f32.xlu2 %v1157_v39 }
0x1127   :  { %v1168_v22 = vpop.xlane.xlu1 %1167 }
0x1128   :  { %v1172_v40 = vmul.f32 %v1168_v22, %v1594_v25 }
0x112a   :  { %v1174_v41 = vadd.f32 1e-05, %v1172_v40 }
0x112c   :  { %1376 = vrsqrt.f32 %v1174_v41  ;;  %vm1182_vm12 = vweird.f32 %v1174_v41 }
0x1132   :  { %v1377_v42 = vpop.eup %1376 }
0x1133   :  { %v1177_v43 = vmul.f32 %v1377_v42, %v1174_v41  ;;  %vm1183_vm10 = vweird.f32 %v1377_v42 }
0x1134   :  { %vm1184_vm13 = vmor %vm1182_vm12, %vm1183_vm10 }
0x1135   :  { %v1178_v44 = vmul.f32 %v1377_v42, %v1177_v43 }
0x1137   :  { %v1179_v45 = vmul.f32 0.5, %v1178_v44 }
0x1139   :  { %v1180_v46 = vsub.f32 1.5, %v1179_v45 }
0x113b   :  { %v1181_v47 = vmul.f32 %v1377_v42, %v1180_v46 }
0x113d   :  { %v1185_v49 = vsel %vm1184_vm13, %v1377_v42, %v1181_v47 }
0x113e   :  { %v1196_v50 = vmul.f32 %v1185_v49, %v1162_v34 }
0x1140   :  { %v1201_v52 = vmul.f32 %v1328_v48, %v1196_v50 }
0x1142   :  { %v1206_v54 = vadd.f32 %v1329_v51, %v1201_v52 }
0x1144   :  { %v1159_v55 = vpop.xlane.xlu2 %1158  ;;  %1208 = vst.msk [vmem:[#allocation3] sm:$0xff] %vm123_vm2, %v1206_v54 }
0x1145   :  { %v1161_v56 = vmul.f32 %v1159_v55, %v1594_v25 }
0x1147   :  { %v1163_v57 = vsub.f32 %v1153_v38, %v1161_v56 }
0x1149   :  { %v1165_v58 = vmul.f32 %v1163_v57, %v1163_v57 }
0x114b   :  { %v1169_v60 = vsel %vm123_vm2, %v1165_v58, 0.0 }
0x114c   :  { %1170 = vadd.xlane.f32.xlu0 %v1169_v60 }
0x11bf   :  { %v1171_v59 = vpop.xlane.xlu0 %1170 }
0x11c0   :  { %v1173_v61 = vmul.f32 %v1171_v59, %v1594_v25 }
0x11c2   :  { %v1175_v63 = vadd.f32 1e-05, %v1173_v61 }
0x11c4   :  { %1378 = vrsqrt.f32 %v1175_v63  ;;  %vm1192_vm15 = vweird.f32 %v1175_v63 }
0x11ca   :  { %v1379_v0 = vpop.eup %1378 }
0x11cb   :  { %v1187_v62 = vmul.f32 %v1379_v0, %v1175_v63  ;;  %vm1193_vm14 = vweird.f32 %v1379_v0 }
0x11cc   :  { %vm1194_vm0 = vmor %vm1192_vm15, %vm1193_vm14 }
0x11cd   :  { %v1188_v1 = vmul.f32 %v1379_v0, %v1187_v62 }
0x11cf   :  { %v1189_v2 = vmul.f32 0.5, %v1188_v1 }
0x11d1   :  { %v1190_v3 = vsub.f32 1.5, %v1189_v2 }
0x11d3   :  { %v1191_v4 = vmul.f32 %v1379_v0, %v1190_v3 }
0x11d5   :  { %v1195_v5 = vsel %vm1194_vm0, %v1379_v0, %v1191_v4 }
0x11d6   :  { %v1197_v7 = vmul.f32 %v1195_v5, %v1163_v57 }
0x11d8   :  { %v1202_v25 = vmul.f32 %v1328_v48, %v1197_v7 }
0x11da   :  { %v1207_v8 = vadd.f32 %v1329_v51, %v1202_v25 }
0x11dc   :  { %1209 = vst.msk [vmem:[#allocation3 + $0x8] sm:$0xff] %vm123_vm2, %v1207_v8 }
0x11dd   :  { %1222 = dma.vmem_to_hbm [thread:$0]  %s1215_s14, 256, %s1217_s28, [#allocation4], %s1414_s29, %s1414_s29, %s1415_s7  }
0x11de   :  { %1404 = dma.done.wait [#allocation4], 256  }
0x11df   :  { %1405 = vsyncadd [#allocation4], 4294967040 }
0x11e0   :  { %1227 = vsyncpa [#allocation4], 1 }

</bundles_post_ra>
